<compile_context>
chip_gen: v7x
topology: tpu7x:2x2x1
jax: 0.10.0
libtpu: 0.0.40
codegen_flags: <defaults>
</compile_context>

<pallas_src>
import jax
import jax.numpy as jnp
from jax.experimental import pallas as pl
from jax.experimental.pallas import tpu as pltpu


def _vmem_capacity_bytes():
    """Physical per-core VMEM bytes (falls back to the v5e/v6e value)."""
    try:
        return int(pltpu.get_tpu_info().vmem_capacity_bytes)
    except Exception:
        return 128 * 1024 * 1024


def _make_kernel(num_k, tile_hw, hw, fill):
    """Builds the fused (max-pool -> fc1 -> relu -> fc2 -> sigmoid) kernel."""
    tail_valid = hw - (num_k - 1) * tile_hw     # valid lanes in the last tile
    needs_mask = tail_valid != tile_hw          # only if H*W % tile_hw != 0

    def kernel(x_ref, w1_ref, w2_ref, o_ref, m_ref):
        # x_ref : (TN, C, tile_hw)  input tile (C on sublanes, H*W on lanes)
        # w1_ref: (Ch, C)           fc1 weight
        # w2_ref: (C, Ch)           fc2 weight
        # o_ref : (TN, 1, C)        per-batch attention output (lane-dense)
        # m_ref : (TN, C, 1) f32    running-max scratch (persists across k)
        k = pl.program_id(1)

        @pl.when(k == 0)
        def _init():
            m_ref[...] = jnp.full(m_ref.shape, -jnp.inf, m_ref.dtype)

        def _fold_max(x):
            # Max is exact in the input dtype; cast only the tiny result.
            tile_max = jnp.max(x, axis=-1, keepdims=True).astype(jnp.float32)
            m_ref[...] = jnp.maximum(m_ref[...], tile_max)

        if needs_mask:
            @pl.when(k < num_k - 1)
            def _body():
                _fold_max(x_ref[...])

            @pl.when(k == num_k - 1)
            def _tail():
                x = x_ref[...]
                lane = jax.lax.broadcasted_iota(jnp.int32, x.shape, 2)
                _fold_max(jnp.where(lane < tail_valid, x,
                                    jnp.asarray(fill, x.dtype)))
        else:
            _fold_max(x_ref[...])

        @pl.when(k == num_k - 1)
        def _finalize():
            pooled = m_ref[...][:, :, 0]                   # (TN, C)  f32
            w1 = w1_ref[...].astype(jnp.float32)           # (Ch, C)
            w2 = w2_ref[...].astype(jnp.float32)           # (C, Ch)
            # fc1: h[n, j] = sum_c pooled[n, c] * w1[j, c]      (lane reduce)
            h = jnp.sum(pooled[:, None, :] * w1[None, :, :], axis=-1)  # (TN, Ch)
            h = jnp.maximum(h, 0.0)                                    # ReLU
            # fc2: out[n, c] = sum_j h[n, j] * w2[c, j]          (lane reduce)
            logits = jnp.sum(h[:, None, :] * w2[None, :, :], axis=-1)  # (TN, C)
            o_ref[...] = jax.nn.sigmoid(logits)[:, None, :].astype(o_ref.dtype)

    return kernel


def channel_attention(x_nchw, fc1_weight, fc2_weight, *, target_block_bytes=None):
    """ChannelAttention forward.

    x_nchw     : (N, C, H, W)
    fc1_weight : (C//16, C, 1, 1)   PyTorch Conv2d 1x1 weight
    fc2_weight : (C, C//16, 1, 1)
    returns    : (N, C, 1, 1) sigmoid attention weights
    """
    N, C, H, W = x_nchw.shape
    Ch = fc1_weight.shape[0]
    assert fc1_weight.shape == (Ch, C, 1, 1), fc1_weight.shape
    assert fc2_weight.shape == (C, Ch, 1, 1), fc2_weight.shape

    w1 = fc1_weight.reshape(Ch, C)          # tiny; pure reshape
    w2 = fc2_weight.reshape(C, Ch)

    hw = H * W
    x_flat = x_nchw.reshape(N, C, hw)       # pure reshape: no transpose, no pad
    itemsize = x_flat.dtype.itemsize
    LANE = 128

    vmem_cap = _vmem_capacity_bytes()
    if target_block_bytes is None:
        # ~8 MiB/buffer on v5e/v6e (128 MiB VMEM), ~5.3 MiB on v7x (64 MiB/TC):
        # large enough to amortize ~0.35us/step overhead, small enough that the
        # double-buffered pipeline stays comfortably inside scoped VMEM.
        target_block_bytes = min(8 << 20, vmem_cap // 12)

    per_batch_bytes = C * hw * itemsize
    if per_batch_bytes <= target_block_bytes:
        # Small feature map: keep all of H*W in one block and fold batches.
        tile_hw = hw
        tn = max(1, min(N, target_block_bytes // per_batch_bytes))
    else:
        # Large feature map: tile the H*W reduction; one batch per block.
        tn = 1
        lanes = max(LANE, (target_block_bytes // (C * itemsize)) // LANE * LANE)
        tile_hw = min(hw, lanes)

    num_n = pl.cdiv(N, tn)
    num_k = pl.cdiv(hw, tile_hw)
    grid = (num_n, num_k)

    if jnp.issubdtype(x_flat.dtype, jnp.floating):
        fill = float("-inf")
    else:
        fill = int(jnp.iinfo(x_flat.dtype).min)

    kernel = _make_kernel(num_k, tile_hw, hw, fill)

    # Explicit scoped-VMEM budget: cover the double-buffered pipeline with
    # headroom, but stay under ~75% of physical VMEM (~48 MiB on v7x).
    x_block_bytes = tn * C * tile_hw * itemsize
    w_bytes = 2 * C * Ch * w1.dtype.itemsize
    out_block_bytes = tn * C * itemsize
    need = 2 * (x_block_bytes + w_bytes + out_block_bytes) + tn * C * 4
    vmem_limit = min(int(0.75 * vmem_cap), max(32 << 20, (need * 3) // 2))
    vmem_limit = int(max(vmem_limit, need + (2 << 20)))

    cost = pl.CostEstimate(
        flops=N * C * hw + 4 * N * C * Ch,
        transcendentals=N * C,                               # sigmoid
        bytes_accessed=N * C * hw * itemsize                 # x read (dominant)
                       + w_bytes + N * C * itemsize,
    )

    y = pl.pallas_call(
        kernel,
        out_shape=jax.ShapeDtypeStruct((N, 1, C), x_nchw.dtype),
        grid_spec=pltpu.PrefetchScalarGridSpec(
            num_scalar_prefetch=0,
            grid=grid,
            in_specs=[
                pl.BlockSpec((tn, C, tile_hw), lambda n, k: (n, 0, k)),  # x
                pl.BlockSpec((Ch, C), lambda n, k: (0, 0)),              # fc1
                pl.BlockSpec((C, Ch), lambda n, k: (0, 0)),              # fc2
            ],
            out_specs=pl.BlockSpec((tn, 1, C), lambda n, k: (n, 0, 0)),
            scratch_shapes=[pltpu.VMEM((tn, C, 1), jnp.float32)],
        ),
        compiler_params=pltpu.CompilerParams(
            dimension_semantics=("parallel", "arbitrary"),
            vmem_limit_bytes=vmem_limit),
        cost_estimate=cost,
    )(x_flat, w1, w2)

    return y.reshape(N, C, 1, 1)


def _reference(x, fc1_weight, fc2_weight):
    """Plain-JAX reference of the PyTorch forward (eval semantics)."""
    N, C, H, W = x.shape
    Ch = fc1_weight.shape[0]
    w1 = fc1_weight.reshape(Ch, C)
    w2 = fc2_weight.reshape(C, Ch)
    pooled = jnp.max(x.reshape(N, C, H * W), axis=-1)                   # (N, C)
    h = jnp.maximum(
        jnp.einsum('nc,jc->nj', pooled, w1,
                   precision=jax.lax.Precision.HIGHEST), 0.0)           # (N, Ch)
    out = jax.nn.sigmoid(
        jnp.einsum('nj,cj->nc', h, w2,
                   precision=jax.lax.Precision.HIGHEST))                # (N, C)
    return out.reshape(N, C, 1, 1)


if __name__ == "__main__":
    key = jax.random.PRNGKey(0)
    k_x, k_w1, k_w2 = jax.random.split(key, 3)

    # in_planes must be a multiple of 16 (the module hardcodes // 16).
    N, C, H, W = 2, 64, 16, 16
    Ch = C // 16

    fc1_weight = jax.random.normal(k_w1, (Ch, C, 1, 1), dtype=jnp.float32) * 0.1
    fc2_weight = jax.random.normal(k_w2, (C, Ch, 1, 1), dtype=jnp.float32) * 0.1

    # Case 1: default path (batch folding, whole H*W in one block).
    x = jax.random.normal(k_x, (N, C, H, W), dtype=jnp.float32)
    out = jax.block_until_ready(channel_attention(x, fc1_weight, fc2_weight))
    ref = _reference(x, fc1_weight, fc2_weight)
    assert out.shape == (N, C, 1, 1), out.shape
    assert jnp.allclose(out, ref, atol=1e-5, rtol=1e-5), "mismatch (case 1)"

    # Case 2: force the H*W-tiled path with a non-divisible tail (in-kernel
    # masking of the last tile) by shrinking the per-block byte budget.
    x2 = jax.random.normal(k_x, (3, C, 15, 15), dtype=jnp.float32)
    out2 = jax.block_until_ready(
        channel_attention(x2, fc1_weight, fc2_weight,
                          target_block_bytes=C * 128 * 4))
    ref2 = _reference(x2, fc1_weight, fc2_weight)
    assert out2.shape == (3, C, 1, 1), out2.shape
    assert jnp.allclose(out2, ref2, atol=1e-5, rtol=1e-5), "mismatch (case 2)"

    # Case 3: batch folding with a partial last batch block (N % TN != 0).
    x3 = jax.random.normal(k_x, (5, C, 4, 4), dtype=jnp.float32)
    out3 = jax.block_until_ready(
        channel_attention(x3, fc1_weight, fc2_weight,
                          target_block_bytes=2 * C * 16 * 4))
    ref3 = _reference(x3, fc1_weight, fc2_weight)
    assert out3.shape == (5, C, 1, 1), out3.shape
    assert jnp.allclose(out3, ref3, atol=1e-5, rtol=1e-5), "mismatch (case 3)"

    print("KERNEL_OK")
</pallas_src>

<mosaic_0001>
module attributes {stable_mosaic.version = 11 : i64} {
  func.func @kernel(%arg0: i32, %arg1: i32, %arg2: memref<2x64x256xf32, #tpu.memory_space<vmem>>, %arg3: memref<4x64xf32, #tpu.memory_space<vmem>>, %arg4: memref<64x4xf32, #tpu.memory_space<vmem>>, %arg5: memref<2x1x64xf32, #tpu.memory_space<vmem>>, %arg6: memref<2x64x1xf32, #tpu.memory_space<vmem>>) attributes {dimension_semantics = [#tpu.dimension_semantics<parallel>, #tpu.dimension_semantics<arbitrary>], iteration_bounds = array<i64: 1, 1>, scalar_prefetch = 0 : i64, scratch_operands = 1 : i64, tpu.core_type = #tpu.core_type<tc>, window_params = [{transform_indices = @transform_0, window_bounds = array<i64: 2, 64, 256>}, {pipeline_mode = #tpu.pipeline_mode<synchronous>, transform_indices = @transform_1, window_bounds = array<i64: 4, 64>}, {pipeline_mode = #tpu.pipeline_mode<synchronous>, transform_indices = @transform_2, window_bounds = array<i64: 64, 4>}, {transform_indices = @transform_3, window_bounds = array<i64: 2, 1, 64>}]} {
    %c0_i32 = arith.constant 0 : i32
    %0 = arith.cmpi eq, %arg1, %c0_i32 : i32
    %1 = arith.extui %0 : i1 to i32
    %c0_i32_0 = arith.constant 0 : i32
    %2 = arith.cmpi ne, %1, %c0_i32_0 : i32
    scf.if %2 {
      %cst_11 = arith.constant 0xFF800000 : f32
      %12 = vector.broadcast %cst_11 : f32 to vector<2x64x1xf32>
      %c0_12 = arith.constant 0 : index
      %c0_13 = arith.constant 0 : index
      %c0_14 = arith.constant 0 : index
      %13 = vector.load %arg6[%c0_12, %c0_13, %c0_14] : memref<2x64x1xf32, #tpu.memory_space<vmem>>, vector<2x64x1xf32>
      tpu.vector_store %arg6[%c0_12, %c0_13, %c0_14], %12 {strides = array<i32>} : memref<2x64x1xf32, #tpu.memory_space<vmem>>, vector<2x64x1xf32>,
    } else {
    }
    %c0 = arith.constant 0 : index
    %c0_1 = arith.constant 0 : index
    %c0_2 = arith.constant 0 : index
    %3 = vector.load %arg2[%c0, %c0_1, %c0_2] : memref<2x64x256xf32, #tpu.memory_space<vmem>>, vector<2x64x256xf32>
    %cst = arith.constant dense<0xFF800000> : vector<2x64xf32>
    %4 = vector.multi_reduction <maximumf>, %3, %cst [2] : vector<2x64x256xf32> to vector<2x64xf32>
    %5 = vector.shape_cast %4 : vector<2x64xf32> to vector<2x64x1xf32>
    %c0_3 = arith.constant 0 : index
    %c0_4 = arith.constant 0 : index
    %c0_5 = arith.constant 0 : index
    %6 = vector.load %arg6[%c0_3, %c0_4, %c0_5] : memref<2x64x1xf32, #tpu.memory_space<vmem>>, vector<2x64x1xf32>
    %7 = arith.maximumf %6, %5 : vector<2x64x1xf32>
    %c0_6 = arith.constant 0 : index
    %c0_7 = arith.constant 0 : index
    %c0_8 = arith.constant 0 : index
    %8 = vector.load %arg6[%c0_6, %c0_7, %c0_8] : memref<2x64x1xf32, #tpu.memory_space<vmem>>, vector<2x64x1xf32>
    tpu.vector_store %arg6[%c0_6, %c0_7, %c0_8], %7 {strides = array<i32>} : memref<2x64x1xf32, #tpu.memory_space<vmem>>, vector<2x64x1xf32>,
    %c0_i32_9 = arith.constant 0 : i32
    %9 = arith.cmpi eq, %arg1, %c0_i32_9 : i32
    %10 = arith.extui %9 : i1 to i32
    %c0_i32_10 = arith.constant 0 : i32
    %11 = arith.cmpi ne, %10, %c0_i32_10 : i32
    scf.if %11 {
      %c0_11 = arith.constant 0 : index
      %c0_12 = arith.constant 0 : index
      %c0_13 = arith.constant 0 : index
      %12 = vector.load %arg6[%c0_11, %c0_12, %c0_13] : memref<2x64x1xf32, #tpu.memory_space<vmem>>, vector<2x64x1xf32>
      %13 = vector.shape_cast %12 : vector<2x64x1xf32> to vector<2x64xf32>
      %c0_14 = arith.constant 0 : index
      %c0_15 = arith.constant 0 : index
      %14 = vector.load %arg3[%c0_14, %c0_15] : memref<4x64xf32, #tpu.memory_space<vmem>>, vector<4x64xf32>
      %c0_16 = arith.constant 0 : index
      %c0_17 = arith.constant 0 : index
      %15 = vector.load %arg4[%c0_16, %c0_17] : memref<64x4xf32, #tpu.memory_space<vmem>>, vector<64x4xf32>
      %16 = vector.shape_cast %13 : vector<2x64xf32> to vector<2x1x64xf32>
      %17 = vector.shape_cast %14 : vector<4x64xf32> to vector<1x4x64xf32>
      %18 = vector.broadcast %16 : vector<2x1x64xf32> to vector<2x4x64xf32>
      %19 = vector.broadcast %17 : vector<1x4x64xf32> to vector<2x4x64xf32>
      %20 = arith.mulf %18, %19 : vector<2x4x64xf32>
      %cst_18 = arith.constant dense<0.000000e+00> : vector<2x4xf32>
      %21 = vector.multi_reduction <add>, %20, %cst_18 [2] : vector<2x4x64xf32> to vector<2x4xf32>
      %cst_19 = arith.constant 0.000000e+00 : f32
      %22 = vector.broadcast %cst_19 : f32 to vector<2x4xf32>
      %23 = arith.maximumf %21, %22 : vector<2x4xf32>
      %24 = vector.shape_cast %23 : vector<2x4xf32> to vector<2x1x4xf32>
      %25 = vector.shape_cast %15 : vector<64x4xf32> to vector<1x64x4xf32>
      %26 = vector.broadcast %24 : vector<2x1x4xf32> to vector<2x64x4xf32>
      %27 = vector.broadcast %25 : vector<1x64x4xf32> to vector<2x64x4xf32>
      %28 = arith.mulf %26, %27 : vector<2x64x4xf32>
      %cst_20 = arith.constant dense<0.000000e+00> : vector<2x64xf32>
      %29 = vector.multi_reduction <add>, %28, %cst_20 [2] : vector<2x64x4xf32> to vector<2x64xf32>
      %30 = arith.negf %29 : vector<2x64xf32>
      %31 = math.exp %30 : vector<2x64xf32>
      %cst_21 = arith.constant 1.000000e+00 : f32
      %32 = vector.broadcast %cst_21 : f32 to vector<2x64xf32>
      %33 = arith.addf %32, %31 : vector<2x64xf32>
      %34 = arith.divf %32, %33 : vector<2x64xf32>
      %35 = vector.shape_cast %34 : vector<2x64xf32> to vector<2x1x64xf32>
      %c0_22 = arith.constant 0 : index
      %c0_23 = arith.constant 0 : index
      %c0_24 = arith.constant 0 : index
      %36 = vector.load %arg5[%c0_22, %c0_23, %c0_24] : memref<2x1x64xf32, #tpu.memory_space<vmem>>, vector<2x1x64xf32>
      tpu.vector_store %arg5[%c0_22, %c0_23, %c0_24], %35 {strides = array<i32>} : memref<2x1x64xf32, #tpu.memory_space<vmem>>, vector<2x1x64xf32>,
    } else {
    }
    return
  }
  func.func @transform_0(%arg0: i32, %arg1: i32) -> (i32, i32, i32) {
    %c0_i32 = arith.constant 0 : i32
    %c0_i32_0 = arith.constant 0 : i32
    return %arg0, %c0_i32, %arg1 : i32, i32, i32
  }
  func.func @transform_1(%arg0: i32, %arg1: i32) -> (i32, i32) {
    %c0_i32 = arith.constant 0 : i32
    %c0_i32_0 = arith.constant 0 : i32
    %c0_i32_1 = arith.constant 0 : i32
    return %c0_i32, %c0_i32_0 : i32, i32
  }
  func.func @transform_2(%arg0: i32, %arg1: i32) -> (i32, i32) {
    %c0_i32 = arith.constant 0 : i32
    %c0_i32_0 = arith.constant 0 : i32
    %c0_i32_1 = arith.constant 0 : i32
    return %c0_i32, %c0_i32_0 : i32, i32
  }
  func.func @transform_3(%arg0: i32, %arg1: i32) -> (i32, i32, i32) {
    %c0_i32 = arith.constant 0 : i32
    %c0_i32_0 = arith.constant 0 : i32
    %c0_i32_1 = arith.constant 0 : i32
    return %arg0, %c0_i32, %c0_i32_0 : i32, i32, i32
  }
}

</mosaic_0001>

<bundles_post_ra>
// kernel: tpu_custom_call.1
= control target key start
LH: loop header
LB: loop body
LE: loop exit
PB: predicated region body
PF: predicated region fallthrough
CT: control target
= control target key end

     0   :  { %8 = vsyncpa [#allocation4], 0  ;;  %s4878_s0 = inlined_call_operand.hbm [shape: f32[2,64,256], index: 0, kind: input, shape index: {}]   ;;  %s4879_s1 = inlined_call_operand.vmem [shape: f32[4,64], index: 1, kind: input, shape index: {}]   ;;  %s4880_s2 = inlined_call_operand.vmem [shape: f32[64,4], index: 2, kind: input, shape index: {}]   ;;  %s4881_s3 = inlined_call_operand.hbm [shape: f32[2,1,64], index: 3, kind: output, shape index: {}]  }
   0x1   :  { %9 = vsyncpa [#allocation5], 0  ;;  %s3250_s12 = smov [#allocation3]   ;;  %s3202_s16 = scalar_lea.hbm %s4878_s0, 4096 }
   0x2   :  { %s15_s13 = sshll.u32 %s3250_s12, 4  ;;  %p3203_p0 = scmp.ne.s32.totalorder %s4878_s0, %s3202_s16  ;;  %s16_s13 = int_to_ptr.vmem [resolvable:$true] %s15_s13 }
   0x3   :  { %p3206_p1 = scmp.lt.u32.totalorder %s3202_s16, %s4878_s0 }
   0x5   :  { %p3208_p2 = pnand %p3206_p1, %p3203_p0 }
   0x7   :  { %3211 = shalt.err (!%p3208_p2)
}
   0x8   :  { %s3212_s21 = scalar_lea.vmem %s16_s13, 4096  ;;  %p3217_p4 = scmp.lt.s32.totalorder %s16_s13, %s16_s13 }
   0x9   :  { %p3213_p3 = scmp.ne.s32.totalorder %s16_s13, %s3212_s21  ;;  %p3218_p5 = scmp.lt.s32.totalorder %s3212_s21, %s3212_s21 }
   0xb   :  { %p3219_p6 = por %p3218_p5, %p3217_p4 }
   0xd   :  { %p3220_p7 = pnand %p3219_p6, %p3213_p3 }
   0xf   :  { %3223 = shalt.err (!%p3220_p7)
}
  0x10   :  { %s3251_s22 = smov 256   ;;  %s3252_s23 = smov 16  }
  0x11   :  { %21 = dma.hbm_to_vmem [thread:$0]  %s4878_s0, 4096, %s16_s13, [#allocation4], %s3251_s22, %s3251_s22, %s3252_s23  }
  0x12   :  { %3246 = dma.done.wait [#allocation4], 4096  }
  0x13   :  { %3247 = vsyncadd [#allocation4], 4294963200  ;;  %vm33_vm0 = vcmask 7168   ;;  %v3253_v0 = vmov -inf   ;;  %v54_v1 = vld [vmem:[#allocation3 + $0x20] sm:$0xff]  ;;  %v55_v2 = vld [vmem:[#allocation3 + $0x28] sm:$0xff]  ;;  %v208_v49 = vlaneseq }
  0x14   :  { %36 = vst.msk [vmem:[#allocation2 + $0x10] sm:$0xff] %vm33_vm0, %v3253_v0  ;;  %34 = vst.msk [vmem:[#allocation2] sm:$0xff] %vm33_vm0, %v3253_v0  ;;  %v50_v3 = vld [vmem:[#allocation3] sm:$0xff]  ;;  %v88_v4 = vmax.f32 %v54_v1, %v55_v2  ;;  %v51_v5 = vld [vmem:[#allocation3 + $0x8] sm:$0xff]  ;;  %v3254_v54 = vmov 0   ;;  %vm711_vm1 = vcmask 130112  }
  0x15   :  { %35 = vst.msk [vmem:[#allocation2 + $0x8] sm:$0xff] %vm33_vm0, %v3253_v0  ;;  %37 = vst.msk [vmem:[#allocation2 + $0x18] sm:$0xff] %vm33_vm0, %v3253_v0  ;;  %v56_v6 = vld [vmem:[#allocation3 + $0x30] sm:$0xff]  ;;  %v57_v7 = vld [vmem:[#allocation3 + $0x38] sm:$0xff]  ;;  %v82_v8 = vmax.f32 %v50_v3, %v51_v5  ;;  %v3307_v50 = vshrl.u32 %v208_v49, 7  ;;  %3137 = vset.pattern.permute.xlu1 %v3254_v54  ;;  %3136 = vset.pattern.permute.xlu0 %v3254_v54  ;;  %vm718_vm2 = vcmask 195712  }
  0x16   :  { %38 = vst.msk [vmem:[#allocation2 + $0x20] sm:$0xff] %vm33_vm0, %v3253_v0  ;;  %39 = vst.msk [vmem:[#allocation2 + $0x28] sm:$0xff] %vm33_vm0, %v3253_v0  ;;  %v52_v9 = vld [vmem:[#allocation3 + $0x10] sm:$0xff]  ;;  %v53_v10 = vld [vmem:[#allocation3 + $0x18] sm:$0xff]  ;;  %89 = vmax.xlane.f32.xlu1 %v88_v4  ;;  %v91_v11 = vmax.f32 %v56_v6, %v57_v7  ;;  %vm725_vm3 = vcmask 261312   ;;  %vm732_vm4 = vcmask 326912  }
  0x17   :  { %40 = vst.msk [vmem:[#allocation2 + $0x30] sm:$0xff] %vm33_vm0, %v3253_v0  ;;  %41 = vst.msk [vmem:[#allocation2 + $0x38] sm:$0xff] %vm33_vm0, %v3253_v0  ;;  %83 = vmax.xlane.f32.xlu0 %v82_v8  ;;  %v85_v12 = vmax.f32 %v52_v9, %v53_v10  ;;  %v60_v13 = vld [vmem:[#allocation3 + $0x50] sm:$0xff]  ;;  %v61_v14 = vld [vmem:[#allocation3 + $0x58] sm:$0xff]  ;;  %v3310_v51 = vsub.s32 0, %v3307_v50  ;;  %v3317_v55 = vsub.s32 1, %v3307_v50 }
  0x18   :  { %42 = vst.msk [vmem:[#allocation2 + $0x40] sm:$0xff] %vm33_vm0, %v3253_v0  ;;  %43 = vst.msk [vmem:[#allocation2 + $0x48] sm:$0xff] %vm33_vm0, %v3253_v0  ;;  %v58_v15 = vld [vmem:[#allocation3 + $0x40] sm:$0xff]  ;;  %v59_v16 = vld [vmem:[#allocation3 + $0x48] sm:$0xff]  ;;  %v97_v17 = vmax.f32 %v60_v13, %v61_v14  ;;  %v3321_v57 = vsub.s32 2, %v3307_v50  ;;  %v3325_v59 = vsub.s32 3, %v3307_v50 }
  0x19   :  { %44 = vst.msk [vmem:[#allocation2 + $0x50] sm:$0xff] %vm33_vm0, %v3253_v0  ;;  %45 = vst.msk [vmem:[#allocation2 + $0x58] sm:$0xff] %vm33_vm0, %v3253_v0  ;;  %v94_v18 = vmax.f32 %v58_v15, %v59_v16  ;;  %v64_v19 = vld [vmem:[#allocation3 + $0x70] sm:$0xff]  ;;  %v65_v20 = vld [vmem:[#allocation3 + $0x78] sm:$0xff]  ;;  %vm739_vm5 = vcmask 392512   ;;  %vm746_vm6 = vcmask 458112  }
  0x1a   :  { %46 = vst.msk [vmem:[#allocation2 + $0x60] sm:$0xff] %vm33_vm0, %v3253_v0  ;;  %47 = vst.msk [vmem:[#allocation2 + $0x68] sm:$0xff] %vm33_vm0, %v3253_v0  ;;  %92 = vmax.xlane.f32.xlu1 %v91_v11  ;;  %v62_v21 = vld [vmem:[#allocation3 + $0x60] sm:$0xff]  ;;  %v63_v22 = vld [vmem:[#allocation3 + $0x68] sm:$0xff]  ;;  %v103_v23 = vmax.f32 %v64_v19, %v65_v20  ;;  %vm753_vm7 = vcmask 523712   ;;  %vm1028_vm8 = vcmask 1041409  }
  0x1b   :  { %48 = vst.msk [vmem:[#allocation2 + $0x70] sm:$0xff] %vm33_vm0, %v3253_v0  ;;  %49 = vst.msk [vmem:[#allocation2 + $0x78] sm:$0xff] %vm33_vm0, %v3253_v0  ;;  %86 = vmax.xlane.f32.xlu0 %v85_v12  ;;  %v100_v24 = vmax.f32 %v62_v21, %v63_v22  ;;  %v68_v25 = vld [vmem:[#allocation3 + $0x90] sm:$0xff]  ;;  %v69_v26 = vld [vmem:[#allocation3 + $0x98] sm:$0xff]  ;;  %vm1030_vm9 = vcmask 1042434   ;;  %vm1032_vm10 = vcmask 1043459  }
  0x1c   :  { %v66_v27 = vld [vmem:[#allocation3 + $0x80] sm:$0xff]  ;;  %v67_v28 = vld [vmem:[#allocation3 + $0x88] sm:$0xff]  ;;  %v109_v29 = vmax.f32 %v68_v25, %v69_v26  ;;  %v72_v31 = vld [vmem:[#allocation3 + $0xb0] sm:$0xff]  ;;  %vm1039_vm11 = vcmask 519168   ;;  %vm2723_vm12 = vcmask 1044484   ;;  %vm2725_vm13 = vcmask 1045509  }
  0x1d   :  { %v106_v30 = vmax.f32 %v66_v27, %v67_v28  ;;  %v73_v32 = vld [vmem:[#allocation3 + $0xb8] sm:$0xff]  ;;  %v70_v33 = vld [vmem:[#allocation3 + $0xa0] sm:$0xff]  ;;  %v71_v34 = vld [vmem:[#allocation3 + $0xa8] sm:$0xff]  ;;  %vm2727_vm14 = vcmask 1046534   ;;  %vm2729_vm15 = vcmask 1047559  }
  0x1e   :  { %98 = vmax.xlane.f32.xlu1 %v97_v17  ;;  %v115_v35 = vmax.f32 %v72_v31, %v73_v32  ;;  %v112_v36 = vmax.f32 %v70_v33, %v71_v34  ;;  %v76_v37 = vld [vmem:[#allocation3 + $0xd0] sm:$0xff]  ;;  %v77_v38 = vld [vmem:[#allocation3 + $0xd8] sm:$0xff]  ;;  %v74_v39 = vld [vmem:[#allocation3 + $0xc0] sm:$0xff] }
  0x1f   :  { %95 = vmax.xlane.f32.xlu0 %v94_v18  ;;  %v75_v40 = vld [vmem:[#allocation3 + $0xc8] sm:$0xff]  ;;  %v121_v41 = vmax.f32 %v76_v37, %v77_v38  ;;  %v80_v43 = vld [vmem:[#allocation3 + $0xf0] sm:$0xff]  ;;  %v81_v44 = vld [vmem:[#allocation3 + $0xf8] sm:$0xff] }
  0x20   :  { %v118_v42 = vmax.f32 %v74_v39, %v75_v40  ;;  %v78_v45 = vld [vmem:[#allocation3 + $0xe0] sm:$0xff]  ;;  %v79_v46 = vld [vmem:[#allocation3 + $0xe8] sm:$0xff]  ;;  %v127_v47 = vmax.f32 %v80_v43, %v81_v44  ;;  %v132_v61 = vld [vmem:[#allocation2 + $0x10] sm:$0xff] }
  0x21   :  { %v124_v48 = vmax.f32 %v78_v45, %v79_v46  ;;  %v198_v52 = vld [vmem:[%s4879_s1] sm:$0xf]  ;;  %v133_v3 = vld [vmem:[#allocation2 + $0x18] sm:$0xff]  ;;  %v131_v4 = vld [vmem:[#allocation2 + $0x8] sm:$0xff] }
  0x22   :  { %104 = vmax.xlane.f32.xlu1 %v103_v23  ;;  %v211_v53 = vrot.slane %v198_v52, %v3310_v51  ;;  %v246_v56 = vrot.slane %v198_v52, %v3317_v55  ;;  %v281_v58 = vrot.slane %v198_v52, %v3321_v57  ;;  %v316_v60 = vrot.slane %v198_v52, %v3325_v59  ;;  %v130_v62 = vld [vmem:[#allocation2] sm:$0xff]  ;;  %v135_v9 = vld [vmem:[#allocation2 + $0x28] sm:$0xff]  ;;  %v137_v15 = vld [vmem:[#allocation2 + $0x38] sm:$0xff] }
  0x23   :  { %101 = vmax.xlane.f32.xlu0 %v100_v24  ;;  %v134_v10 = vld [vmem:[#allocation2 + $0x20] sm:$0xff]  ;;  %v136_v16 = vld [vmem:[#allocation2 + $0x30] sm:$0xff]  ;;  %v139_v21 = vld [vmem:[#allocation2 + $0x48] sm:$0xff] }
  0x24   :  { %v138_v22 = vld [vmem:[#allocation2 + $0x40] sm:$0xff]  ;;  %v141_v27 = vld [vmem:[#allocation2 + $0x58] sm:$0xff]  ;;  %v140_v28 = vld [vmem:[#allocation2 + $0x50] sm:$0xff] }
  0x25   :  { %v143_v33 = vld [vmem:[#allocation2 + $0x68] sm:$0xff]  ;;  %v142_v34 = vld [vmem:[#allocation2 + $0x60] sm:$0xff]  ;;  %v145_v39 = vld [vmem:[#allocation2 + $0x78] sm:$0xff] }
  0x26   :  { %110 = vmax.xlane.f32.xlu1 %v109_v29  ;;  %v144_v40 = vld [vmem:[#allocation2 + $0x70] sm:$0xff] }
  0x27   :  { %107 = vmax.xlane.f32.xlu0 %v106_v30 }
  0x2a   :  { %116 = vmax.xlane.f32.xlu1 %v115_v35 }
  0x2b   :  { %113 = vmax.xlane.f32.xlu0 %v112_v36 }
  0x2e   :  { %122 = vmax.xlane.f32.xlu1 %v121_v41 }
  0x2f   :  { %119 = vmax.xlane.f32.xlu0 %v118_v42 }
  0x32   :  { %128 = vmax.xlane.f32.xlu1 %v127_v47 }
  0x33   :  { %125 = vmax.xlane.f32.xlu0 %v124_v48 }
  0x43   :  { %217 = vbcast.lane.b32.xlu1 %v211_v53, 264 }
  0x47   :  { %221 = vbcast.lane.b32.xlu1 %v211_v53, 272 }
  0x49   :  { %213 = vbcast.lane.b32.xlu0 %v211_v53, 256 }
  0x4b   :  { %225 = vbcast.lane.b32.xlu1 %v211_v53, 280 }
  0x4d   :  { %229 = vbcast.lane.b32.xlu0 %v211_v53, 288 }
  0x4f   :  { %233 = vbcast.lane.b32.xlu1 %v211_v53, 296 }
  0x51   :  { %237 = vbcast.lane.b32.xlu0 %v211_v53, 304 }
  0x53   :  { %241 = vbcast.lane.b32.xlu1 %v211_v53, 312 }
  0x55   :  { %248 = vbcast.lane.b32.xlu0 %v246_v56, 256 }
  0x57   :  { %252 = vbcast.lane.b32.xlu1 %v246_v56, 264 }
  0x59   :  { %256 = vbcast.lane.b32.xlu0 %v246_v56, 272 }
  0x5b   :  { %260 = vbcast.lane.b32.xlu1 %v246_v56, 280 }
  0x5d   :  { %264 = vbcast.lane.b32.xlu0 %v246_v56, 288 }
  0x5f   :  { %268 = vbcast.lane.b32.xlu1 %v246_v56, 296 }
  0x61   :  { %272 = vbcast.lane.b32.xlu0 %v246_v56, 304 }
  0x63   :  { %276 = vbcast.lane.b32.xlu1 %v246_v56, 312 }
  0x65   :  { %283 = vbcast.lane.b32.xlu0 %v281_v58, 256 }
  0x67   :  { %287 = vbcast.lane.b32.xlu1 %v281_v58, 264 }
  0x69   :  { %291 = vbcast.lane.b32.xlu0 %v281_v58, 272 }
  0x6b   :  { %295 = vbcast.lane.b32.xlu1 %v281_v58, 280 }
  0x6d   :  { %299 = vbcast.lane.b32.xlu0 %v281_v58, 288 }
  0x6f   :  { %303 = vbcast.lane.b32.xlu1 %v281_v58, 296 }
  0x71   :  { %307 = vbcast.lane.b32.xlu0 %v281_v58, 304 }
  0x73   :  { %311 = vbcast.lane.b32.xlu1 %v281_v58, 312 }
  0x75   :  { %318 = vbcast.lane.b32.xlu0 %v316_v60, 256 }
  0x77   :  { %322 = vbcast.lane.b32.xlu1 %v316_v60, 264 }
  0x79   :  { %326 = vbcast.lane.b32.xlu0 %v316_v60, 272 }
  0x7b   :  { %330 = vbcast.lane.b32.xlu1 %v316_v60, 280 }
  0x7d   :  { %334 = vbcast.lane.b32.xlu0 %v316_v60, 288 }
  0x7f   :  { %338 = vbcast.lane.b32.xlu1 %v316_v60, 296 }
  0x81   :  { %342 = vbcast.lane.b32.xlu0 %v316_v60, 304 }
  0x83   :  { %346 = vbcast.lane.b32.xlu1 %v316_v60, 312 }
  0xa3   :  { %v90_v63 = vpop.xlane.xlu1 %89 }
  0xa4   :  { %v148_v0 = vmax.f32 %v132_v61, %v90_v63  ;;  %v84_v1 = vpop.xlane.xlu0 %83 }
  0xa5   :  { %v146_v2 = vmax.f32 %v130_v62, %v84_v1 }
  0xa6   :  { %165 = vst.msk [vmem:[#allocation2 + $0x10] sm:$0xff] %vm33_vm0, %v148_v0 }
  0xa7   :  { %163 = vst.msk [vmem:[#allocation2] sm:$0xff] %vm33_vm0, %v146_v2  ;;  %v93_v5 = vpop.xlane.xlu1 %92 }
  0xa8   :  { %v149_v6 = vmax.f32 %v133_v3, %v93_v5  ;;  %v87_v7 = vpop.xlane.xlu0 %86 }
  0xa9   :  { %v147_v8 = vmax.f32 %v131_v4, %v87_v7 }
  0xaa   :  { %166 = vst.msk [vmem:[#allocation2 + $0x18] sm:$0xff] %vm33_vm0, %v149_v6 }
  0xab   :  { %164 = vst.msk [vmem:[#allocation2 + $0x8] sm:$0xff] %vm33_vm0, %v147_v8  ;;  %v99_v11 = vpop.xlane.xlu1 %98 }
  0xac   :  { %v151_v12 = vmax.f32 %v135_v9, %v99_v11  ;;  %v96_v13 = vpop.xlane.xlu0 %95 }
  0xad   :  { %v150_v14 = vmax.f32 %v134_v10, %v96_v13  ;;  %v3358_v56 = vld [vmem:[#allocation2 + $0x10] sm:$0xff] }
  0xae   :  { %168 = vst.msk [vmem:[#allocation2 + $0x28] sm:$0xff] %vm33_vm0, %v151_v12  ;;  %v3352_v52 = vld [vmem:[#allocation2] sm:$0xff] }
  0xaf   :  { %167 = vst.msk [vmem:[#allocation2 + $0x20] sm:$0xff] %vm33_vm0, %v150_v14  ;;  %v105_v17 = vpop.xlane.xlu1 %104 }
  0xb0   :  { %v153_v18 = vmax.f32 %v137_v15, %v105_v17  ;;  %v102_v19 = vpop.xlane.xlu0 %101 }
  0xb1   :  { %v152_v20 = vmax.f32 %v136_v16, %v102_v19  ;;  %v3368_v63 = vld [vmem:[#allocation2 + $0x18] sm:$0xff] }
  0xb2   :  { %170 = vst.msk [vmem:[#allocation2 + $0x38] sm:$0xff] %vm33_vm0, %v153_v18  ;;  %v3346_v46 = vld [vmem:[#allocation2 + $0x8] sm:$0xff] }
  0xb3   :  { %169 = vst.msk [vmem:[#allocation2 + $0x30] sm:$0xff] %vm33_vm0, %v152_v20  ;;  %v111_v23 = vpop.xlane.xlu1 %110 }
  0xb4   :  { %v155_v24 = vmax.f32 %v139_v21, %v111_v23  ;;  %v108_v25 = vpop.xlane.xlu0 %107 }
  0xb5   :  { %v154_v26 = vmax.f32 %v138_v22, %v108_v25  ;;  %v3380_v5 = vld [vmem:[#allocation2 + $0x28] sm:$0xff] }
  0xb6   :  { %172 = vst.msk [vmem:[#allocation2 + $0x48] sm:$0xff] %vm33_vm0, %v155_v24  ;;  %v3364_v61 = vld [vmem:[#allocation2 + $0x20] sm:$0xff] }
  0xb7   :  { %171 = vst.msk [vmem:[#allocation2 + $0x40] sm:$0xff] %vm33_vm0, %v154_v26  ;;  %v117_v29 = vpop.xlane.xlu1 %116 }
  0xb8   :  { %v157_v30 = vmax.f32 %v141_v27, %v117_v29  ;;  %v114_v31 = vpop.xlane.xlu0 %113 }
  0xb9   :  { %v156_v32 = vmax.f32 %v140_v28, %v114_v31  ;;  %v3390_v10 = vld [vmem:[#allocation2 + $0x38] sm:$0xff] }
  0xba   :  { %174 = vst.msk [vmem:[#allocation2 + $0x58] sm:$0xff] %vm33_vm0, %v157_v30  ;;  %v3376_v3 = vld [vmem:[#allocation2 + $0x30] sm:$0xff] }
  0xbb   :  { %173 = vst.msk [vmem:[#allocation2 + $0x50] sm:$0xff] %vm33_vm0, %v156_v32  ;;  %v123_v35 = vpop.xlane.xlu1 %122 }
  0xbc   :  { %v159_v36 = vmax.f32 %v143_v33, %v123_v35  ;;  %v120_v37 = vpop.xlane.xlu0 %119 }
  0xbd   :  { %v158_v38 = vmax.f32 %v142_v34, %v120_v37 }
  0xbe   :  { %176 = vst.msk [vmem:[#allocation2 + $0x68] sm:$0xff] %vm33_vm0, %v159_v36 }
  0xbf   :  { %175 = vst.msk [vmem:[#allocation2 + $0x60] sm:$0xff] %vm33_vm0, %v158_v38  ;;  %v129_v41 = vpop.xlane.xlu1 %128 }
  0xc0   :  { %v161_v42 = vmax.f32 %v145_v39, %v129_v41  ;;  %v126_v43 = vpop.xlane.xlu0 %125 }
  0xc1   :  { %v160_v44 = vmax.f32 %v144_v40, %v126_v43 }
  0xc2   :  { %178 = vst.msk [vmem:[#allocation2 + $0x78] sm:$0xff] %vm33_vm0, %v161_v42 }
  0xc3   :  { %177 = vst.msk [vmem:[#allocation2 + $0x70] sm:$0xff] %vm33_vm0, %v160_v44  ;;  %v3344_v45 = vpop.permute.xlu1 %217  ;;  %vm2852_vm0 = vcmask 31744  }
  0xc4   :  { %v381_v47 = vmul.f32 %v3344_v45, %v3346_v46  ;;  %v3350_v48 = vpop.permute.xlu0 %213 }
  0xc5   :  { %v380_v53 = vmul.f32 %v3350_v48, %v3352_v52 }
  0xc6   :  { %512 = vperm.xlu1 %3137, %v381_v47  }
  0xc7   :  { %509 = vperm.xlu0 %3136, %v380_v53   ;;  %v3356_v54 = vpop.permute.xlu1 %221 }
  0xc8   :  { %v382_v58 = vmul.f32 %v3356_v54, %v3358_v56  ;;  %v3362_v60 = vpop.permute.xlu0 %229 }
  0xc9   :  { %v384_v0 = vmul.f32 %v3362_v60, %v3364_v61 }
  0xca   :  { %515 = vperm.xlu1 %3137, %v382_v58  }
  0xcb   :  { %v3366_v62 = vpop.permute.xlu1 %225 }
  0xcc   :  { %v383_v1 = vmul.f32 %v3366_v62, %v3368_v63  ;;  %v3374_v2 = vpop.permute.xlu0 %237 }
  0xcd   :  { %v386_v6 = vmul.f32 %v3374_v2, %v3376_v3 }
  0xce   :  { %521 = vperm.xlu1 %3137, %v384_v0   ;;  %518 = vperm.xlu0 %3136, %v383_v1  }
  0xcf   :  { %v3378_v4 = vpop.permute.xlu1 %233 }
  0xd0   :  { %v385_v7 = vmul.f32 %v3378_v4, %v3380_v5  ;;  %v3386_v8 = vpop.permute.xlu0 %248 }
  0xd1   :  { %v388_v11 = vmul.f32 %v3386_v8, %v3352_v52 }
  0xd2   :  { %527 = vperm.xlu1 %3137, %v386_v6   ;;  %524 = vperm.xlu0 %3136, %v385_v7  }
  0xd3   :  { %v3388_v9 = vpop.permute.xlu1 %241 }
  0xd4   :  { %v387_v12 = vmul.f32 %v3388_v9, %v3390_v10  ;;  %v3396_v13 = vpop.permute.xlu0 %256 }
  0xd5   :  { %v390_v15 = vmul.f32 %v3396_v13, %v3358_v56 }
  0xd6   :  { %533 = vperm.xlu1 %3137, %v388_v11   ;;  %530 = vperm.xlu0 %3136, %v387_v12  }
  0xd7   :  { %v3398_v14 = vpop.permute.xlu1 %252 }
  0xd8   :  { %v389_v16 = vmul.f32 %v3398_v14, %v3346_v46  ;;  %v3404_v17 = vpop.permute.xlu0 %264 }
  0xd9   :  { %v392_v19 = vmul.f32 %v3404_v17, %v3364_v61 }
  0xda   :  { %539 = vperm.xlu1 %3137, %v390_v15   ;;  %536 = vperm.xlu0 %3136, %v389_v16   ;;  %v190_v15 = vld [vmem:[#allocation2 + $0x40] sm:$0xff] }
  0xdb   :  { %v3406_v18 = vpop.permute.xlu1 %260 }
  0xdc   :  { %v391_v20 = vmul.f32 %v3406_v18, %v3368_v63  ;;  %v3412_v21 = vpop.permute.xlu0 %272 }
  0xdd   :  { %v394_v23 = vmul.f32 %v3412_v21, %v3376_v3 }
  0xde   :  { %545 = vperm.xlu1 %3137, %v392_v19   ;;  %542 = vperm.xlu0 %3136, %v391_v20   ;;  %v191_v19 = vld [vmem:[#allocation2 + $0x48] sm:$0xff]  ;;  %v192_v20 = vld [vmem:[#allocation2 + $0x50] sm:$0xff] }
  0xdf   :  { %v3414_v22 = vpop.permute.xlu1 %268 }
  0xe0   :  { %v393_v24 = vmul.f32 %v3414_v22, %v3380_v5  ;;  %v3420_v25 = vpop.permute.xlu0 %283 }
  0xe1   :  { %v396_v27 = vmul.f32 %v3420_v25, %v3352_v52 }
  0xe2   :  { %551 = vperm.xlu1 %3137, %v394_v23   ;;  %548 = vperm.xlu0 %3136, %v393_v24   ;;  %v413_v23 = vmul.f32 %v3344_v45, %v191_v19  ;;  %v194_v24 = vld [vmem:[#allocation2 + $0x60] sm:$0xff]  ;;  %v197_v45 = vld [vmem:[#allocation2 + $0x78] sm:$0xff] }
  0xe3   :  { %v3422_v26 = vpop.permute.xlu1 %276 }
  0xe4   :  { %v395_v28 = vmul.f32 %v3422_v26, %v3390_v10  ;;  %v3428_v29 = vpop.permute.xlu0 %291 }
  0xe5   :  { %v398_v31 = vmul.f32 %v3428_v29, %v3358_v56 }
  0xe6   :  { %557 = vperm.xlu1 %3137, %v396_v27   ;;  %554 = vperm.xlu0 %3136, %v395_v28   ;;  %v416_v27 = vmul.f32 %v3362_v60, %v194_v24  ;;  %v422_v60 = vmul.f32 %v3396_v13, %v192_v20  ;;  %v427_v13 = vmul.f32 %v3422_v26, %v197_v45 }
  0xe7   :  { %v3430_v30 = vpop.permute.xlu1 %287 }
  0xe8   :  { %v397_v32 = vmul.f32 %v3430_v30, %v3346_v46  ;;  %v3436_v33 = vpop.permute.xlu0 %299 }
  0xe9   :  { %v400_v35 = vmul.f32 %v3436_v33, %v3364_v61 }
  0xea   :  { %563 = vperm.xlu1 %3137, %v398_v31   ;;  %560 = vperm.xlu0 %3136, %v397_v32  }
  0xeb   :  { %v3438_v34 = vpop.permute.xlu1 %295 }
  0xec   :  { %v399_v36 = vmul.f32 %v3438_v34, %v3368_v63  ;;  %v3444_v37 = vpop.permute.xlu0 %307 }
  0xed   :  { %v402_v39 = vmul.f32 %v3444_v37, %v3376_v3 }
  0xee   :  { %569 = vperm.xlu1 %3137, %v400_v35   ;;  %566 = vperm.xlu0 %3136, %v399_v36   ;;  %v419_v35 = vmul.f32 %v3388_v9, %v197_v45  ;;  %v424_v36 = vmul.f32 %v3404_v17, %v194_v24  ;;  %v428_v9 = vmul.f32 %v3420_v25, %v190_v15 }
  0xef   :  { %v3446_v38 = vpop.permute.xlu1 %303  ;;  %v429_v17 = vmul.f32 %v3430_v30, %v191_v19 }
  0xf0   :  { %v401_v40 = vmul.f32 %v3446_v38, %v3380_v5  ;;  %v3452_v41 = vpop.permute.xlu0 %318 }
  0xf1   :  { %v404_v43 = vmul.f32 %v3452_v41, %v3352_v52  ;;  %v436_v26 = vmul.f32 %v3452_v41, %v190_v15 }
  0xf2   :  { %575 = vperm.xlu1 %3137, %v402_v39   ;;  %572 = vperm.xlu0 %3136, %v401_v40  }
  0xf3   :  { %v3454_v42 = vpop.permute.xlu1 %311 }
  0xf4   :  { %v403_v44 = vmul.f32 %v3454_v42, %v3390_v10  ;;  %v3460_v47 = vpop.permute.xlu0 %326 }
  0xf5   :  { %v406_v58 = vmul.f32 %v3460_v47, %v3358_v56  ;;  %v438_v30 = vmul.f32 %v3460_v47, %v192_v20  ;;  %v3528_v47 = vsub.s32 4, %v3307_v50 }
  0xf6   :  { %581 = vperm.xlu1 %3137, %v404_v43   ;;  %578 = vperm.xlu0 %3136, %v403_v44  }
  0xf7   :  { %v3462_v53 = vpop.permute.xlu1 %322 }
  0xf8   :  { %v405_v0 = vmul.f32 %v3462_v53, %v3346_v46  ;;  %v3468_v1 = vpop.permute.xlu0 %334 }
  0xf9   :  { %v408_v6 = vmul.f32 %v3468_v1, %v3364_v61  ;;  %v412_v61 = vmul.f32 %v3350_v48, %v190_v15  ;;  %v196_v48 = vld [vmem:[#allocation2 + $0x70] sm:$0xff] }
  0xfa   :  { %587 = vperm.xlu1 %3137, %v406_v58   ;;  %584 = vperm.xlu0 %3136, %v405_v0   ;;  %v418_v31 = vmul.f32 %v3374_v2, %v196_v48 }
  0xfb   :  { %v3470_v52 = vpop.permute.xlu1 %330 }
  0xfc   :  { %v407_v7 = vmul.f32 %v3470_v52, %v3368_v63  ;;  %v3476_v11 = vpop.permute.xlu0 %342 }
  0xfd   :  { %v410_v46 = vmul.f32 %v3476_v11, %v3376_v3  ;;  %v414_v3 = vmul.f32 %v3356_v54, %v192_v20  ;;  %v420_v54 = vmul.f32 %v3386_v8, %v190_v15  ;;  %v442_v39 = vmul.f32 %v3476_v11, %v196_v48 }
  0xfe   :  { %593 = vperm.xlu1 %3137, %v408_v6   ;;  %590 = vperm.xlu0 %3136, %v407_v7   ;;  %v3541_v7 = vsub.s32 5, %v3307_v50  ;;  %v3550_v15 = vsub.s32 7, %v3307_v50 }
  0xff   :  { %v3478_v56 = vpop.permute.xlu1 %338 }
 0x100   :  { %v409_v12 = vmul.f32 %v3478_v56, %v3380_v5  ;;  %v193_v5 = vld [vmem:[#allocation2 + $0x58] sm:$0xff] }
 0x101   :  { %v415_v28 = vmul.f32 %v3366_v62, %v193_v5  ;;  %v421_v62 = vmul.f32 %v3398_v14, %v191_v19  ;;  %v423_v2 = vmul.f32 %v3406_v18, %v193_v5  ;;  %v430_v14 = vmul.f32 %v3428_v29, %v192_v20 }
 0x102   :  { %599 = vperm.xlu1 %3137, %v410_v46   ;;  %596 = vperm.xlu0 %3136, %v409_v12   ;;  %v432_v18 = vmul.f32 %v3436_v33, %v194_v24  ;;  %v435_v29 = vmul.f32 %v3454_v42, %v197_v45  ;;  %v437_v33 = vmul.f32 %v3462_v53, %v191_v19 }
 0x103   :  { %v3484_v16 = vpop.permute.xlu1 %346 }
 0x104   :  { %v411_v63 = vmul.f32 %v3484_v16, %v3390_v10  ;;  %v195_v10 = vld [vmem:[#allocation2 + $0x68] sm:$0xff]  ;;  %v443_v42 = vmul.f32 %v3484_v16, %v197_v45 }
 0x105   :  { %v417_v32 = vmul.f32 %v3378_v4, %v195_v10  ;;  %v426_v4 = vmul.f32 %v3412_v21, %v196_v48  ;;  %v425_v8 = vmul.f32 %v3414_v22, %v195_v10  ;;  %v431_v21 = vmul.f32 %v3438_v34, %v193_v5 }
 0x106   :  { %605 = vperm.xlu1 %3137, %v412_v61   ;;  %602 = vperm.xlu0 %3136, %v411_v63   ;;  %v434_v22 = vmul.f32 %v3444_v37, %v196_v48  ;;  %v433_v25 = vmul.f32 %v3446_v38, %v195_v10  ;;  %v440_v34 = vmul.f32 %v3468_v1, %v194_v24  ;;  %v199_v38 = vld [vmem:[%s4880_s2] sm:$0xff] }
 0x107   :  { %v439_v37 = vmul.f32 %v3470_v52, %v193_v5  ;;  %v441_v40 = vmul.f32 %v3478_v56, %v195_v10  ;;  %v1066_v41 = vrot.slane %v199_v38, %v3317_v55  ;;  %v1073_v44 = vrot.slane %v199_v38, %v3321_v57 }
 0x108   :  { %v1059_v53 = vrot.slane %v199_v38, %v3310_v51  ;;  %v1087_v1 = vrot.slane %v199_v38, %v3528_v47  ;;  %v3537_v52 = vsub.s32 6, %v3307_v50  ;;  %v1080_v6 = vrot.slane %v199_v38, %v3325_v59 }
 0x109   :  { %v1094_v12 = vrot.slane %v199_v38, %v3541_v7  ;;  %v1108_v63 = vrot.slane %v199_v38, %v3550_v15 }
 0x10a   :  { %611 = vperm.xlu1 %3137, %v414_v3   ;;  %608 = vperm.xlu0 %3136, %v413_v23   ;;  %v1101_v46 = vrot.slane %v199_v38, %v3537_v52 }
 0x10e   :  { %617 = vperm.xlu1 %3137, %v416_v27   ;;  %614 = vperm.xlu0 %3136, %v415_v28  }
 0x112   :  { %623 = vperm.xlu1 %3137, %v418_v31   ;;  %620 = vperm.xlu0 %3136, %v417_v32   ;;  %v701_v31 = vand.u32 127, %v208_v49 }
 0x114   :  { %v3578_v49 = vsub.s32 %v701_v31, %v3307_v50  ;;  %v748_v38 = vadd.s32 4294967240, %v701_v31 }
 0x116   :  { %629 = vperm.xlu1 %3137, %v420_v54   ;;  %626 = vperm.xlu0 %3136, %v419_v35   ;;  %v706_v54 = vadd.s32 4294967288, %v701_v31 }
 0x11a   :  { %635 = vperm.xlu1 %3137, %v422_v60   ;;  %632 = vperm.xlu0 %3136, %v421_v62   ;;  %v713_v62 = vadd.s32 4294967280, %v701_v31 }
 0x11e   :  { %641 = vperm.xlu1 %3137, %v424_v36   ;;  %638 = vperm.xlu0 %3136, %v423_v2   ;;  %v727_v36 = vadd.s32 4294967264, %v701_v31  ;;  %v3571_v2 = vsub.s32 %v706_v54, %v3307_v50 }
 0x120   :  { %4902 = vst [vmem:[#allocation9_spill] sm:$0xff] %v3571_v2 }
 0x122   :  { %647 = vperm.xlu1 %3137, %v426_v4   ;;  %644 = vperm.xlu0 %3136, %v425_v8   ;;  %v720_v4 = vadd.s32 4294967272, %v701_v31 }
 0x126   :  { %653 = vperm.xlu1 %3137, %v428_v9   ;;  %650 = vperm.xlu0 %3136, %v427_v13   ;;  %v741_v13 = vadd.s32 4294967248, %v701_v31 }
 0x12a   :  { %659 = vperm.xlu1 %3137, %v430_v14   ;;  %656 = vperm.xlu0 %3136, %v429_v17   ;;  %v734_v14 = vadd.s32 4294967256, %v701_v31 }
 0x12e   :  { %665 = vperm.xlu1 %3137, %v432_v18   ;;  %662 = vperm.xlu0 %3136, %v431_v21   ;;  %v3582_v18 = vsub.s32 %v713_v62, %v3307_v50  ;;  %v3585_v21 = vsub.s32 %v727_v36, %v3307_v50 }
 0x130   :  { %4903 = vst [vmem:[#allocation10_spill] sm:$0xff] %v3582_v18  ;;  %4904 = vst [vmem:[#allocation11_spill] sm:$0xff] %v3585_v21 }
 0x132   :  { %671 = vperm.xlu1 %3137, %v434_v22   ;;  %668 = vperm.xlu0 %3136, %v433_v25   ;;  %v3588_v22 = vsub.s32 %v720_v4, %v3307_v50 }
 0x134   :  { %4905 = vst [vmem:[#allocation12_spill] sm:$0xff] %v3588_v22 }
 0x136   :  { %677 = vperm.xlu1 %3137, %v436_v26   ;;  %674 = vperm.xlu0 %3136, %v435_v29  }
 0x13a   :  { %683 = vperm.xlu1 %3137, %v438_v30   ;;  %680 = vperm.xlu0 %3136, %v437_v33   ;;  %v3595_v33 = vsub.s32 %v741_v13, %v3307_v50 }
 0x13c   :  { %4906 = vst [vmem:[#allocation13_spill] sm:$0xff] %v3595_v33 }
 0x13e   :  { %689 = vperm.xlu1 %3137, %v440_v34   ;;  %686 = vperm.xlu0 %3136, %v439_v37   ;;  %v3598_v34 = vsub.s32 %v734_v14, %v3307_v50 }
 0x140   :  { %4907 = vst [vmem:[#allocation14_spill] sm:$0xff] %v3598_v34 }
 0x142   :  { %695 = vperm.xlu1 %3137, %v442_v39   ;;  %692 = vperm.xlu0 %3136, %v441_v40  }
 0x145   :  { %v3524_v43 = vpop.permute.xlu1 %512 }
 0x146   :  { %698 = vperm.xlu0 %3136, %v443_v42   ;;  %1068 = vbcast.lane.b32.xlu1 %v1066_v41, 256  ;;  %v3531_v58 = vpop.permute.xlu0 %509  ;;  %v710_v42 = vrot.slane %v3524_v43, %v3571_v2 }
 0x149   :  { %v3533_v0 = vpop.permute.xlu1 %515 }
 0x14a   :  { %1075 = vbcast.lane.b32.xlu1 %v1073_v44, 256  ;;  %1061 = vbcast.lane.b32.xlu0 %v1059_v53, 256  ;;  %v705_v44 = vrot.slane %v3531_v58, %v3578_v49 }
 0x14c   :  { %v712_v31 = vsel %vm711_vm1, %v710_v42, %v705_v44 }
 0x14d   :  { %v3543_v11 = vpop.permute.xlu1 %521  ;;  %v3545_v56 = vpop.permute.xlu0 %518 }
 0x14e   :  { %1089 = vbcast.lane.b32.xlu1 %v1087_v1, 256  ;;  %1082 = vbcast.lane.b32.xlu0 %v1080_v6, 256  ;;  %v717_v1 = vrot.slane %v3533_v0, %v3582_v18  ;;  %v724_v6 = vrot.slane %v3545_v56, %v3588_v22  ;;  %v3621_v0 = vsub.s32 %v748_v38, %v3307_v50 }
 0x14f   :  { %v731_v50 = vrot.slane %v3543_v11, %v3585_v21 }
 0x150   :  { %4908 = vst [vmem:[#allocation15_spill] sm:$0xff] %v3621_v0  ;;  %v719_v54 = vsel %vm718_vm2, %v717_v1, %v712_v31 }
 0x151   :  { %v3552_v16 = vpop.permute.xlu1 %527  ;;  %v3554_v61 = vpop.permute.xlu0 %524  ;;  %v726_v4 = vsel %vm725_vm3, %v724_v6, %v719_v54 }
 0x152   :  { %1103 = vbcast.lane.b32.xlu1 %v1101_v46, 256  ;;  %1096 = vbcast.lane.b32.xlu0 %v1094_v12, 256  ;;  %v745_v38 = vrot.slane %v3552_v16, %v3595_v33 }
 0x155   :  { %v534_v19 = vpop.permute.xlu1 %533  ;;  %v3557_v20 = vpop.permute.xlu0 %530 }
 0x156   :  { %1110 = vbcast.lane.b32.xlu0 %v1108_v63, 256  ;;  %v758_v25 = vrot.slane %v534_v19, %v3578_v49 }
 0x159   :  { %v540_v23 = vpop.permute.xlu1 %539  ;;  %v537_v3 = vpop.permute.xlu0 %536 }
 0x15a   :  { %v762_v17 = vrot.slane %v537_v3, %v3571_v2  ;;  %v767_v37 = vrot.slane %v540_v23, %v3582_v18 }
 0x15c   :  { %v763_v39 = vsel %vm711_vm1, %v762_v17, %v758_v25 }
 0x15d   :  { %v3559_v24 = vpop.permute.xlu1 %545  ;;  %v543_v5 = vpop.permute.xlu0 %542  ;;  %v768_v58 = vsel %vm718_vm2, %v767_v37, %v763_v39 }
 0x15e   :  { %v772_v40 = vrot.slane %v543_v5, %v3588_v22  ;;  %v777_v43 = vrot.slane %v3559_v24, %v3585_v21 }
 0x160   :  { %v773_v56 = vsel %vm725_vm3, %v772_v40, %v768_v58 }
 0x161   :  { %v3561_v27 = vpop.permute.xlu1 %551  ;;  %v3563_v28 = vpop.permute.xlu0 %548  ;;  %v778_v13 = vsel %vm732_vm4, %v777_v43, %v773_v56 }
 0x162   :  { %v782_v5 = vrot.slane %v3563_v28, %v3598_v34  ;;  %v787_v17 = vrot.slane %v3561_v27, %v3595_v33  ;;  %v733_v27 = vsel %vm732_vm4, %v731_v50, %v726_v4 }
 0x164   :  { %v783_v11 = vsel %vm739_vm5, %v782_v5, %v778_v13 }
 0x165   :  { %v558_v48 = vpop.permute.xlu1 %557  ;;  %v3565_v10 = vpop.permute.xlu0 %554  ;;  %v788_v16 = vsel %vm746_vm6, %v787_v17, %v783_v11 }
 0x166   :  { %v797_v41 = vrot.slane %v558_v48, %v3578_v49 }
 0x169   :  { %v564_v32 = vpop.permute.xlu1 %563  ;;  %v561_v45 = vpop.permute.xlu0 %560 }
 0x16a   :  { %v801_v26 = vrot.slane %v561_v45, %v3571_v2  ;;  %v806_v53 = vrot.slane %v564_v32, %v3582_v18 }
 0x16c   :  { %v802_v46 = vsel %vm711_vm1, %v801_v26, %v797_v41  ;;  %v792_v26 = vrot.slane %v3565_v10, %v3621_v0 }
 0x16d   :  { %v3568_v35 = vpop.permute.xlu1 %569  ;;  %v567_v60 = vpop.permute.xlu0 %566  ;;  %v807_v32 = vsel %vm718_vm2, %v806_v53, %v802_v46 }
 0x16e   :  { %v811_v12 = vrot.slane %v567_v60, %v3588_v22  ;;  %v816_v24 = vrot.slane %v3568_v35, %v3585_v21  ;;  %v738_v35 = vrot.slane %v3554_v61, %v3598_v34  ;;  %v793_v6 = vsel %vm753_vm7, %v792_v26, %v788_v16 }
 0x170   :  { %v812_v60 = vsel %vm725_vm3, %v811_v12, %v807_v32  ;;  %v740_v10 = vsel %vm739_vm5, %v738_v35, %v733_v27 }
 0x171   :  { %v3573_v8 = vpop.permute.xlu1 %575  ;;  %v3575_v9 = vpop.permute.xlu0 %572  ;;  %v817_v61 = vsel %vm732_vm4, %v816_v24, %v812_v60  ;;  %v747_v12 = vsel %vm746_vm6, %v745_v38, %v740_v10  ;;  %v3718_v38 = vld [vmem:[%s4880_s2 + $0x10] sm:$0xff] }
 0x172   :  { %v821_v28 = vrot.slane %v3575_v9, %v3598_v34  ;;  %v1171_v27 = vrot.slane %v3718_v38, %v3310_v51 }
 0x174   :  { %v822_v39 = vsel %vm739_vm5, %v821_v28, %v817_v61 }
 0x175   :  { %v582_v29 = vpop.permute.xlu1 %581  ;;  %v3592_v30 = vpop.permute.xlu0 %578 }
 0x176   :  { %v836_v23 = vrot.slane %v582_v29, %v3578_v49  ;;  %v826_v29 = vrot.slane %v3573_v8, %v3595_v33  ;;  %v831_v40 = vrot.slane %v3592_v30, %v3621_v0  ;;  %v752_v8 = vrot.slane %v3557_v20, %v3621_v0 }
 0x178   :  { %v827_v30 = vsel %vm746_vm6, %v826_v29, %v822_v39  ;;  %v754_v43 = vsel %vm753_vm7, %v752_v8, %v747_v12  ;;  %v1199_v8 = vrot.slane %v3718_v38, %v3528_v47 }
 0x179   :  { %v588_v63 = vpop.permute.xlu1 %587  ;;  %v585_v19 = vpop.permute.xlu0 %584  ;;  %v832_v20 = vsel %vm753_vm7, %v831_v40, %v827_v30 }
 0x17a   :  { %v840_v3 = vrot.slane %v585_v19, %v3571_v2  ;;  %v845_v48 = vrot.slane %v588_v63, %v3582_v18 }
 0x17c   :  { %v841_v45 = vsel %vm711_vm1, %v840_v3, %v836_v23  ;;  %v1029_v3 = vsel %vm1028_vm8, %v793_v6, %v754_v43 }
 0x17d   :  { %v594_v62 = vpop.permute.xlu1 %593  ;;  %v591_v36 = vpop.permute.xlu0 %590  ;;  %v846_v9 = vsel %vm718_vm2, %v845_v48, %v841_v45  ;;  %v1031_v5 = vsel %vm1030_vm9, %v832_v20, %v1029_v3 }
 0x17e   :  { %v850_v14 = vrot.slane %v591_v36, %v3588_v22  ;;  %v855_v25 = vrot.slane %v594_v62, %v3585_v21  ;;  %v3697_v36 = vld [vmem:[%s4880_s2 + $0x8] sm:$0xff] }
 0x17f   :  { %v1115_v4 = vrot.slane %v3697_v36, %v3310_v51  ;;  %v1157_v29 = vrot.slane %v3697_v36, %v3537_v52 }
 0x180   :  { %v851_v37 = vsel %vm725_vm3, %v850_v14, %v846_v9  ;;  %v1129_v14 = vrot.slane %v3697_v36, %v3321_v57 }
 0x181   :  { %v600_v41 = vpop.permute.xlu1 %599  ;;  %v597_v42 = vpop.permute.xlu0 %596  ;;  %v856_v1 = vsel %vm732_vm4, %v855_v25, %v851_v37  ;;  %v1143_v25 = vrot.slane %v3697_v36, %v3528_v47 }
 0x182   :  { %v860_v44 = vrot.slane %v597_v42, %v3598_v34  ;;  %v865_v53 = vrot.slane %v600_v41, %v3595_v33  ;;  %v1185_v41 = vrot.slane %v3718_v38, %v3321_v57 }
 0x184   :  { %v861_v46 = vsel %vm739_vm5, %v860_v44, %v856_v1  ;;  %v1213_v1 = vrot.slane %v3718_v38, %v3537_v52 }
 0x185   :  { %v3672_v63 = vpop.permute.xlu1 %605  ;;  %v603_v19 = vpop.permute.xlu0 %602  ;;  %v866_v23 = vsel %vm746_vm6, %v865_v53, %v861_v46 }
 0x186   :  { %v870_v58 = vrot.slane %v603_v19, %v3621_v0  ;;  %v3739_v19 = vld [vmem:[%s4880_s2 + $0x18] sm:$0xff] }
 0x188   :  { %v871_v56 = vsel %vm753_vm7, %v870_v58, %v866_v23  ;;  %v875_v58 = vrot.slane %v3672_v63, %v3578_v49 }
 0x189   :  { %v3680_v48 = vpop.permute.xlu1 %611  ;;  %v609_v31 = vpop.permute.xlu0 %608  ;;  %v1033_v24 = vsel %vm1032_vm10, %v871_v56, %v1031_v5 }
 0x18a   :  { %v1040_v32 = vsel %vm1039_vm11, %v1033_v24, 0.0  ;;  %v879_v6 = vrot.slane %v609_v31, %v3571_v2  ;;  %v884_v5 = vrot.slane %v3680_v48, %v3582_v18  ;;  %v1227_v24 = vrot.slane %v3739_v19, %v3310_v51 }
 0x18b   :  { %1041 = vadd.xlane.f32.xlu1 %v1040_v32 }
 0x18c   :  { %v880_v32 = vsel %vm711_vm1, %v879_v6, %v875_v58 }
 0x18d   :  { %v3684_v45 = vpop.permute.xlu1 %617  ;;  %v3686_v54 = vpop.permute.xlu0 %614 }
 0x18e   :  { %v889_v63 = vrot.slane %v3686_v54, %v3588_v22 }
 0x191   :  { %v3688_v50 = vpop.permute.xlu1 %623  ;;  %v3690_v60 = vpop.permute.xlu0 %620 }
 0x195   :  { %v630_v28 = vpop.permute.xlu1 %629  ;;  %v3692_v62 = vpop.permute.xlu0 %626 }
 0x196   :  { %v914_v30 = vrot.slane %v630_v28, %v3578_v49 }
 0x199   :  { %v636_v35 = vpop.permute.xlu1 %635  ;;  %v633_v13 = vpop.permute.xlu0 %632 }
 0x19a   :  { %v918_v53 = vrot.slane %v633_v13, %v3571_v2  ;;  %v923_v43 = vrot.slane %v636_v35, %v3582_v18 }
 0x19c   :  { %1117 = vbcast.lane.b32.xlu1 %v1115_v4, 256  ;;  %v919_v23 = vsel %vm711_vm1, %v918_v53, %v914_v30  ;;  %v899_v30 = vrot.slane %v3690_v60, %v3598_v34 }
 0x19d   :  { %v3703_v17 = vpop.permute.xlu1 %641  ;;  %v639_v11 = vpop.permute.xlu0 %638 }
 0x19e   :  { %v928_v3 = vrot.slane %v639_v11, %v3588_v22  ;;  %v933_v48 = vrot.slane %v3703_v17, %v3585_v21 }
 0x1a0   :  { %1131 = vbcast.lane.b32.xlu1 %v1129_v14, 256  ;;  %v924_v14 = vsel %vm718_vm2, %v923_v43, %v919_v23 }
 0x1a1   :  { %v3707_v9 = vpop.permute.xlu1 %647  ;;  %v3709_v26 = vpop.permute.xlu0 %644 }
 0x1a2   :  { %v938_v54 = vrot.slane %v3709_v26, %v3598_v34  ;;  %v885_v26 = vsel %vm718_vm2, %v884_v5, %v880_v32 }
 0x1a4   :  { %1145 = vbcast.lane.b32.xlu1 %v1143_v25, 256 }
 0x1a5   :  { %v654_v61 = vpop.permute.xlu1 %653  ;;  %v3713_v37 = vpop.permute.xlu0 %650 }
 0x1a6   :  { %v953_v56 = vrot.slane %v654_v61, %v3578_v49  ;;  %v948_v23 = vrot.slane %v3713_v37, %v3621_v0 }
 0x1a8   :  { %1159 = vbcast.lane.b32.xlu1 %v1157_v29, 256  ;;  %v929_v29 = vsel %vm725_vm3, %v928_v3, %v924_v14  ;;  %v1269_v14 = vrot.slane %v3739_v19, %v3537_v52 }
 0x1a9   :  { %v660_v39 = vpop.permute.xlu1 %659  ;;  %v657_v40 = vpop.permute.xlu0 %656 }
 0x1aa   :  { %v957_v46 = vrot.slane %v657_v40, %v3571_v2  ;;  %v962_v31 = vrot.slane %v660_v39, %v3582_v18 }
 0x1ac   :  { %1173 = vbcast.lane.b32.xlu1 %v1171_v27, 256  ;;  %v958_v28 = vsel %vm711_vm1, %v957_v46, %v953_v56  ;;  %v1241_v27 = vrot.slane %v3739_v19, %v3321_v57  ;;  %v934_v46 = vsel %vm732_vm4, %v933_v48, %v929_v29  ;;  %v3817_v29 = vld [vmem:[%s4880_s2 + $0x20] sm:$0xff] }
 0x1ad   :  { %v666_v42 = vpop.permute.xlu1 %665  ;;  %v663_v10 = vpop.permute.xlu0 %662  ;;  %v963_v17 = vsel %vm718_vm2, %v962_v31, %v958_v28  ;;  %v939_v43 = vsel %vm739_vm5, %v938_v54, %v934_v46  ;;  %v1122_v46 = vrot.slane %v3697_v36, %v3317_v55 }
 0x1ae   :  { %v967_v4 = vrot.slane %v663_v10, %v3588_v22  ;;  %v972_v39 = vrot.slane %v666_v42, %v3585_v21  ;;  %v894_v10 = vrot.slane %v3684_v45, %v3585_v21  ;;  %v890_v42 = vsel %vm725_vm3, %v889_v63, %v885_v26 }
 0x1af   :  { %v943_v45 = vrot.slane %v3707_v9, %v3595_v33  ;;  %v904_v9 = vrot.slane %v3688_v50, %v3595_v33 }
 0x1b0   :  { %1187 = vbcast.lane.b32.xlu1 %v1185_v41, 256  ;;  %v1255_v41 = vrot.slane %v3739_v19, %v3528_v47  ;;  %v895_v5 = vsel %vm732_vm4, %v894_v10, %v890_v42 }
 0x1b1   :  { %v3726_v44 = vpop.permute.xlu1 %671  ;;  %v669_v16 = vpop.permute.xlu0 %668  ;;  %v900_v63 = vsel %vm739_vm5, %v899_v30, %v895_v5  ;;  %v1192_v5 = vrot.slane %v3718_v38, %v3325_v59 }
 0x1b2   :  { %v977_v53 = vrot.slane %v669_v16, %v3598_v34  ;;  %v982_v3 = vrot.slane %v3726_v44, %v3595_v33  ;;  %v909_v44 = vrot.slane %v3692_v62, %v3621_v0  ;;  %v905_v62 = vsel %vm746_vm6, %v904_v9, %v900_v63 }
 0x1b4   :  { %1201 = vbcast.lane.b32.xlu1 %v1199_v8, 256  ;;  %v968_v8 = vsel %vm725_vm3, %v967_v4, %v963_v17  ;;  %v944_v4 = vsel %vm746_vm6, %v943_v45, %v939_v43  ;;  %v910_v54 = vsel %vm753_vm7, %v909_v44, %v905_v62  ;;  %v1136_v45 = vrot.slane %v3697_v36, %v3325_v59 }
 0x1b5   :  { %v678_v12 = vpop.permute.xlu1 %677  ;;  %v3734_v20 = vpop.permute.xlu0 %674  ;;  %v973_v60 = vsel %vm732_vm4, %v972_v39, %v968_v8  ;;  %v1297_v8 = vrot.slane %v3817_v29, %v3321_v57  ;;  %v1234_v44 = vrot.slane %v3739_v19, %v3317_v55 }
 0x1b6   :  { %v992_v11 = vrot.slane %v678_v12, %v3578_v49  ;;  %v978_v31 = vsel %vm739_vm5, %v977_v53, %v973_v60  ;;  %v1311_v53 = vrot.slane %v3817_v29, %v3528_v47 }
 0x1b7   :  { %v983_v48 = vsel %vm746_vm6, %v982_v3, %v978_v31  ;;  %v1164_v3 = vrot.slane %v3697_v36, %v3550_v15  ;;  %v1206_v31 = vrot.slane %v3718_v38, %v3541_v7 }
 0x1b8   :  { %1215 = vbcast.lane.b32.xlu1 %v1213_v1, 256 }
 0x1b9   :  { %v684_v35 = vpop.permute.xlu1 %683  ;;  %v681_v13 = vpop.permute.xlu0 %680 }
 0x1ba   :  { %v996_v25 = vrot.slane %v681_v13, %v3571_v2  ;;  %v1001_v61 = vrot.slane %v684_v35, %v3582_v18  ;;  %v949_v13 = vsel %vm753_vm7, %v948_v23, %v944_v4 }
 0x1bb   :  { %v1034_v39 = vsel %vm1028_vm8, %v949_v13, %v910_v54 }
 0x1bc   :  { %v997_v40 = vsel %vm711_vm1, %v996_v25, %v992_v11  ;;  %1229 = vbcast.lane.b32.xlu1 %v1227_v24, 256  ;;  %v987_v24 = vrot.slane %v3734_v20, %v3621_v0 }
 0x1bd   :  { %v690_v1 = vpop.permute.xlu1 %689  ;;  %v687_v6 = vpop.permute.xlu0 %686  ;;  %v1002_v16 = vsel %vm718_vm2, %v1001_v61, %v997_v40 }
 0x1be   :  { %v1006_v12 = vrot.slane %v687_v6, %v3588_v22  ;;  %v1011_v58 = vrot.slane %v690_v1, %v3585_v21  ;;  %v988_v11 = vsel %vm753_vm7, %v987_v24, %v983_v48  ;;  %v1325_v1 = vrot.slane %v3817_v29, %v3537_v52  ;;  %v3838_v6 = vld [vmem:[%s4880_s2 + $0x28] sm:$0xff]  ;;  %v3878_v24 = vld [vmem:[%s4880_s2 + $0x38] sm:$0xff] }
 0x1bf   :  { %v1035_v40 = vsel %vm1030_vm9, %v988_v11, %v1034_v39  ;;  %v1339_v42 = vrot.slane %v3838_v6, %v3310_v51  ;;  %v1353_v30 = vrot.slane %v3838_v6, %v3321_v57  ;;  %v1381_v43 = vrot.slane %v3838_v6, %v3537_v52 }
 0x1c0   :  { %v1007_v56 = vsel %vm725_vm3, %v1006_v12, %v1002_v16  ;;  %1243 = vbcast.lane.b32.xlu1 %v1241_v27, 256  ;;  %v1367_v12 = vrot.slane %v3838_v6, %v3528_v47  ;;  %v3857_v16 = vld [vmem:[%s4880_s2 + $0x30] sm:$0xff]  ;;  %v1465_v63 = vrot.slane %v3878_v24, %v3321_v57  ;;  %s3255_s2 = smov [#allocation6]  }
 0x1c1   :  { %v696_v32 = vpop.permute.xlu1 %695  ;;  %v693_v37 = vpop.permute.xlu0 %692  ;;  %v1012_v35 = vsel %vm732_vm4, %v1011_v58, %v1007_v56  ;;  %v1150_v58 = vrot.slane %v3697_v36, %v3541_v7  ;;  %v1395_v23 = vrot.slane %v3857_v16, %v3310_v51  ;;  %v1409_v60 = vrot.slane %v3857_v16, %v3321_v57  ;;  %s3101_s15 = sshll.u32 %s3255_s2, 4  ;;  %s3102_s15 = int_to_ptr.vmem [resolvable:$true] %s3101_s15 }
 0x1c2   :  { %v1016_v28 = vrot.slane %v693_v37, %v3598_v34  ;;  %v1021_v50 = vrot.slane %v696_v32, %v3595_v33  ;;  %v1178_v56 = vrot.slane %v3718_v38, %v3317_v55  ;;  %v1423_v9 = vrot.slane %v3857_v16, %v3528_v47  ;;  %s3224_s16 = scalar_lea.vmem %s3102_s15, 32  ;;  %p3229_p9 = scmp.lt.s32.totalorder %s3102_s15, %s3102_s15 }
 0x1c3   :  { %v1437_v36 = vrot.slane %v3857_v16, %v3537_v52  ;;  %v1451_v32 = vrot.slane %v3878_v24, %v3310_v51  ;;  %v1220_v37 = vrot.slane %v3718_v38, %v3550_v15  ;;  %v1493_v38 = vrot.slane %v3878_v24, %v3537_v52  ;;  %p3225_p8 = scmp.ne.s32.totalorder %s3102_s15, %s3224_s16  ;;  %p3230_p10 = scmp.lt.s32.totalorder %s3224_s16, %s3224_s16 }
 0x1c4   :  { %v1017_v20 = vsel %vm739_vm5, %v1016_v28, %v1012_v35  ;;  %1257 = vbcast.lane.b32.xlu1 %v1255_v41, 256  ;;  %v1283_v41 = vrot.slane %v3817_v29, %v3310_v51  ;;  %v1479_v28 = vrot.slane %v3878_v24, %v3528_v47  ;;  %v1248_v51 = vrot.slane %v3739_v19, %v3325_v59 }
 0x1c5   :  { %v699_v25 = vpop.permute.xlu0 %698  ;;  %v1022_v27 = vsel %vm746_vm6, %v1021_v50, %v1017_v20  ;;  %v3892_v4 = vpop.permute.xlu1 %1068  ;;  %v1262_v57 = vrot.slane %v3739_v19, %v3541_v7  ;;  %v1276_v47 = vrot.slane %v3739_v19, %v3550_v15  ;;  %v1290_v35 = vrot.slane %v3817_v29, %v3317_v55  ;;  %p3231_p11 = por %p3230_p10, %p3229_p9 }
 0x1c6   :  { %v1026_v61 = vrot.slane %v699_v25, %v3621_v0  ;;  %v1304_v52 = vrot.slane %v3817_v29, %v3325_v59  ;;  %v1318_v20 = vrot.slane %v3817_v29, %v3541_v7  ;;  %v1332_v19 = vrot.slane %v3817_v29, %v3550_v15 }
 0x1c7   :  { %v1360_v29 = vrot.slane %v3838_v6, %v3325_v59  ;;  %p3232_p12 = pnand %p3231_p11, %p3225_p8 }
 0x1c8   :  { %v1027_v17 = vsel %vm753_vm7, %v1026_v61, %v1022_v27  ;;  %1271 = vbcast.lane.b32.xlu1 %v1269_v14, 256  ;;  %v1346_v61 = vrot.slane %v3838_v6, %v3317_v55 }
 0x1c9   :  { %v1036_v10 = vsel %vm1032_vm10, %v1027_v17, %v1035_v40  ;;  %v3898_v50 = vpop.permute.xlu1 %1075  ;;  %v3916_v11 = vpop.permute.xlu0 %1061 }
 0x1ca   :  { %v1043_v26 = vsel %vm1039_vm11, %v1036_v10, 0.0 }
 0x1cb   :  { %1044 = vadd.xlane.f32.xlu0 %v1043_v26 }
 0x1cc   :  { %1285 = vbcast.lane.b32.xlu1 %v1283_v41, 256  ;;  %v1374_v41 = vrot.slane %v3838_v6, %v3541_v7 }
 0x1cd   :  { %v3904_v13 = vpop.permute.xlu1 %1089 }
 0x1d0   :  { %1299 = vbcast.lane.b32.xlu1 %v1297_v8, 256  ;;  %v1388_v8 = vrot.slane %v3838_v6, %v3550_v15  ;;  %v1416_v6 = vrot.slane %v3857_v16, %v3325_v59 }
 0x1d1   :  { %v3908_v48 = vpop.permute.xlu1 %1103 }
 0x1d4   :  { %1313 = vbcast.lane.b32.xlu1 %v1311_v53, 256 }
 0x1d8   :  { %1327 = vbcast.lane.b32.xlu1 %v1325_v1, 256 }
 0x1dc   :  { %1341 = vbcast.lane.b32.xlu1 %v1339_v42, 256  ;;  %v1402_v42 = vrot.slane %v3857_v16, %v3317_v55 }
 0x1e0   :  { %1355 = vbcast.lane.b32.xlu1 %v1353_v30, 256 }
 0x1e1   :  { %1124 = vbcast.lane.b32.xlu0 %v1122_v46, 256 }
 0x1e4   :  { %1369 = vbcast.lane.b32.xlu1 %v1367_v12, 256 }
 0x1e5   :  { %1138 = vbcast.lane.b32.xlu0 %v1136_v45, 256 }
 0x1e8   :  { %1383 = vbcast.lane.b32.xlu1 %v1381_v43, 256  ;;  %v1430_v43 = vrot.slane %v3857_v16, %v3541_v7 }
 0x1e9   :  { %1152 = vbcast.lane.b32.xlu0 %v1150_v58, 256 }
 0x1ec   :  { %1397 = vbcast.lane.b32.xlu1 %v1395_v23, 256 }
 0x1ed   :  { %1166 = vbcast.lane.b32.xlu0 %v1164_v3, 256  ;;  %v1444_v3 = vrot.slane %v3857_v16, %v3550_v15  ;;  %v1472_v16 = vrot.slane %v3878_v24, %v3325_v59  ;;  %v1500_v59 = vrot.slane %v3878_v24, %v3550_v15 }
 0x1f0   :  { %1411 = vbcast.lane.b32.xlu1 %v1409_v60, 256 }
 0x1f1   :  { %1180 = vbcast.lane.b32.xlu0 %v1178_v56, 256 }
 0x1f4   :  { %1425 = vbcast.lane.b32.xlu1 %v1423_v9, 256  ;;  %v1458_v9 = vrot.slane %v3878_v24, %v3317_v55  ;;  %v1486_v55 = vrot.slane %v3878_v24, %v3541_v7 }
 0x1f5   :  { %1194 = vbcast.lane.b32.xlu0 %v1192_v5, 256 }
 0x1f8   :  { %1439 = vbcast.lane.b32.xlu1 %v1437_v36, 256 }
 0x1f9   :  { %1208 = vbcast.lane.b32.xlu0 %v1206_v31, 256 }
 0x1fc   :  { %1453 = vbcast.lane.b32.xlu1 %v1451_v32, 256 }
 0x1fd   :  { %1222 = vbcast.lane.b32.xlu0 %v1220_v37, 256 }
 0x200   :  { %1467 = vbcast.lane.b32.xlu1 %v1465_v63, 256  ;;  %v3986_v63 = vpop.permute.xlu0 %1082 }
 0x201   :  { %1236 = vbcast.lane.b32.xlu0 %v1234_v44, 256 }
 0x204   :  { %1481 = vbcast.lane.b32.xlu1 %v1479_v28, 256  ;;  %v3996_v7 = vpop.permute.xlu0 %1096 }
 0x205   :  { %1250 = vbcast.lane.b32.xlu0 %v1248_v51, 256 }
 0x208   :  { %1495 = vbcast.lane.b32.xlu1 %v1493_v38, 256 }
 0x209   :  { %1264 = vbcast.lane.b32.xlu0 %v1262_v57, 256 }
 0x20d   :  { %1278 = vbcast.lane.b32.xlu0 %v1276_v47, 256 }
 0x211   :  { %1292 = vbcast.lane.b32.xlu0 %v1290_v35, 256  ;;  %v4008_v35 = vpop.permute.xlu0 %1110 }
 0x215   :  { %1306 = vbcast.lane.b32.xlu0 %v1304_v52, 256 }
 0x218   :  { %v1042_v14 = vpop.xlane.xlu1 %1041 }
 0x219   :  { %v3912_v62 = vmax.f32 %v1042_v14, 0.0  ;;  %1320 = vbcast.lane.b32.xlu0 %v1318_v20, 256 }
 0x21b   :  { %v1568_v25 = vmul.f32 %v3916_v11, %v3912_v62  ;;  %v1570_v27 = vmul.f32 %v3898_v50, %v3912_v62  ;;  %v1572_v17 = vmul.f32 %v3904_v13, %v3912_v62  ;;  %v1574_v10 = vmul.f32 %v3908_v48, %v3912_v62 }
 0x21c   :  { %v3920_v54 = vpop.permute.xlu1 %1117  ;;  %v1569_v38 = vmul.f32 %v3892_v4, %v3912_v62  ;;  %v1571_v15 = vmul.f32 %v3986_v63, %v3912_v62  ;;  %v1573_v20 = vmul.f32 %v3996_v7, %v3912_v62 }
 0x21d   :  { %1334 = vbcast.lane.b32.xlu0 %v1332_v19, 256  ;;  %1825 = vperm.xlu1 %3137, %v1568_v25   ;;  %v1576_v53 = vmul.f32 %v3920_v54, %v3912_v62 }
 0x220   :  { %v3926_v39 = vpop.permute.xlu1 %1131 }
 0x221   :  { %1348 = vbcast.lane.b32.xlu0 %v1346_v61, 256  ;;  %1831 = vperm.xlu1 %3137, %v1570_v27   ;;  %v1578_v30 = vmul.f32 %v3926_v39, %v3912_v62  ;;  %v1575_v27 = vmul.f32 %v4008_v35, %v3912_v62 }
 0x224   :  { %v3932_v40 = vpop.permute.xlu1 %1145 }
 0x225   :  { %1362 = vbcast.lane.b32.xlu0 %v1360_v29, 256  ;;  %1837 = vperm.xlu1 %3137, %v1572_v17   ;;  %v1580_v12 = vmul.f32 %v3932_v40, %v3912_v62 }
 0x228   :  { %v3938_v26 = vpop.permute.xlu1 %1159 }
 0x229   :  { %1376 = vbcast.lane.b32.xlu0 %v1374_v41, 256  ;;  %1843 = vperm.xlu1 %3137, %v1574_v10   ;;  %v1582_v58 = vmul.f32 %v3938_v26, %v3912_v62 }
 0x22c   :  { %v3944_v1 = vpop.permute.xlu1 %1173 }
 0x22d   :  { %1390 = vbcast.lane.b32.xlu0 %v1388_v8, 256  ;;  %1849 = vperm.xlu1 %3137, %v1576_v53   ;;  %v1584_v60 = vmul.f32 %v3944_v1, %v3912_v62 }
 0x230   :  { %v3950_v46 = vpop.permute.xlu1 %1187 }
 0x231   :  { %1404 = vbcast.lane.b32.xlu0 %v1402_v42, 256  ;;  %1855 = vperm.xlu1 %3137, %v1578_v30   ;;  %v1586_v5 = vmul.f32 %v3950_v46, %v3912_v62 }
 0x234   :  { %v3956_v45 = vpop.permute.xlu1 %1201 }
 0x235   :  { %1418 = vbcast.lane.b32.xlu0 %v1416_v6, 256  ;;  %1861 = vperm.xlu1 %3137, %v1580_v12   ;;  %v1588_v31 = vmul.f32 %v3956_v45, %v3912_v62 }
 0x238   :  { %v3962_v23 = vpop.permute.xlu1 %1215 }
 0x239   :  { %1432 = vbcast.lane.b32.xlu0 %v1430_v43, 256  ;;  %1867 = vperm.xlu1 %3137, %v1582_v58   ;;  %v1590_v37 = vmul.f32 %v3962_v23, %v3912_v62 }
 0x23c   :  { %v3968_v56 = vpop.permute.xlu1 %1229 }
 0x23d   :  { %1446 = vbcast.lane.b32.xlu0 %v1444_v3, 256  ;;  %1873 = vperm.xlu1 %3137, %v1584_v60   ;;  %v1592_v28 = vmul.f32 %v3968_v56, %v3912_v62 }
 0x240   :  { %v3974_v36 = vpop.permute.xlu1 %1243 }
 0x241   :  { %1460 = vbcast.lane.b32.xlu0 %v1458_v9, 256  ;;  %1879 = vperm.xlu1 %3137, %v1586_v5   ;;  %v1594_v57 = vmul.f32 %v3974_v36, %v3912_v62 }
 0x244   :  { %v3980_v32 = vpop.permute.xlu1 %1257 }
 0x245   :  { %1474 = vbcast.lane.b32.xlu0 %v1472_v16, 256  ;;  %1885 = vperm.xlu1 %3137, %v1588_v31   ;;  %v1596_v24 = vmul.f32 %v3980_v32, %v3912_v62 }
 0x248   :  { %v3988_v44 = vpop.permute.xlu1 %1271 }
 0x249   :  { %1488 = vbcast.lane.b32.xlu0 %v1486_v55, 256  ;;  %1891 = vperm.xlu1 %3137, %v1590_v37   ;;  %v1598_v14 = vmul.f32 %v3988_v44, %v3912_v62 }
 0x24c   :  { %v3994_v51 = vpop.permute.xlu1 %1285 }
 0x24d   :  { %1502 = vbcast.lane.b32.xlu0 %v1500_v59, 256  ;;  %1897 = vperm.xlu1 %3137, %v1592_v28   ;;  %v1600_v61 = vmul.f32 %v3994_v51, %v3912_v62 }
 0x250   :  { %v4002_v47 = vpop.permute.xlu1 %1299 }
 0x251   :  { %1828 = vperm.xlu0 %3136, %v1569_v38   ;;  %1903 = vperm.xlu1 %3137, %v1594_v57   ;;  %v1602_v41 = vmul.f32 %v4002_v47, %v3912_v62 }
 0x254   :  { %v4010_v52 = vpop.permute.xlu1 %1313 }
 0x255   :  { %1909 = vperm.xlu1 %3137, %v1596_v24   ;;  %1834 = vperm.xlu0 %3136, %v1571_v15   ;;  %v1604_v42 = vmul.f32 %v4010_v52, %v3912_v62 }
 0x258   :  { %v4016_v19 = vpop.permute.xlu1 %1327  ;;  %v4018_v25 = vpop.xlane.xlu0 %1044 }
 0x259   :  { %1915 = vperm.xlu1 %3137, %v1598_v14   ;;  %1840 = vperm.xlu0 %3136, %v1573_v20   ;;  %v1606_v43 = vmul.f32 %v4016_v19, %v3912_v62 }
 0x25c   :  { %v4024_v29 = vpop.permute.xlu1 %1341  ;;  %v4026_v17 = vpop.permute.xlu0 %1124 }
 0x25d   :  { %1921 = vperm.xlu1 %3137, %v1600_v61   ;;  %1846 = vperm.xlu0 %3136, %v1575_v27   ;;  %v1577_v53 = vmul.f32 %v4026_v17, %v3912_v62  ;;  %v1608_v9 = vmul.f32 %v4024_v29, %v3912_v62 }
 0x260   :  { %v4030_v10 = vpop.permute.xlu1 %1355  ;;  %v4032_v8 = vpop.permute.xlu0 %1138 }
 0x261   :  { %1927 = vperm.xlu1 %3137, %v1602_v41   ;;  %1852 = vperm.xlu0 %3136, %v1577_v53   ;;  %v1579_v12 = vmul.f32 %v4032_v8, %v3912_v62  ;;  %v1610_v55 = vmul.f32 %v4030_v10, %v3912_v62 }
 0x264   :  { %v4038_v30 = vpop.permute.xlu1 %1369  ;;  %v4040_v6 = vpop.permute.xlu0 %1152 }
 0x265   :  { %1933 = vperm.xlu1 %3137, %v1604_v42   ;;  %1858 = vperm.xlu0 %3136, %v1579_v12   ;;  %v1581_v60 = vmul.f32 %v4040_v6, %v3912_v62  ;;  %v1612_v38 = vmul.f32 %v4038_v30, %v3912_v62 }
 0x268   :  { %v4046_v58 = vpop.permute.xlu1 %1383  ;;  %v4048_v3 = vpop.permute.xlu0 %1166 }
 0x269   :  { %4909 = vst [vmem:[#allocation16_spill] sm:$0xff] %v4046_v58  ;;  %1939 = vperm.xlu1 %3137, %v1606_v43   ;;  %1864 = vperm.xlu0 %3136, %v1581_v60   ;;  %v1583_v31 = vmul.f32 %v4048_v3, %v3912_v62  ;;  %v1614_v20 = vmul.f32 %v4046_v58, %v3912_v62 }
 0x26c   :  { %v4054_v5 = vpop.permute.xlu1 %1397  ;;  %v4056_v16 = vpop.permute.xlu0 %1180 }
 0x26d   :  { %1945 = vperm.xlu1 %3137, %v1608_v9   ;;  %1870 = vperm.xlu0 %3136, %v1583_v31   ;;  %v1585_v28 = vmul.f32 %v4056_v16, %v3912_v62  ;;  %v1616_v27 = vmul.f32 %v4054_v5, %v3912_v62 }
 0x270   :  { %v4062_v37 = vpop.permute.xlu1 %1411  ;;  %v4064_v59 = vpop.permute.xlu0 %1194 }
 0x271   :  { %1951 = vperm.xlu1 %3137, %v1610_v55   ;;  %1876 = vperm.xlu0 %3136, %v1585_v28   ;;  %v1587_v15 = vmul.f32 %v4064_v59, %v3912_v62  ;;  %v1618_v12 = vmul.f32 %v4062_v37, %v3912_v62 }
 0x274   :  { %v4070_v57 = vpop.permute.xlu0 %1208  ;;  %v4074_v24 = vpop.permute.xlu1 %1425 }
 0x275   :  { %1957 = vperm.xlu1 %3137, %v1612_v38   ;;  %1882 = vperm.xlu0 %3136, %v1587_v15   ;;  %v1589_v61 = vmul.f32 %v4070_v57, %v3912_v62  ;;  %v1620_v31 = vmul.f32 %v4074_v24, %v3912_v62 }
 0x278   :  { %v4078_v14 = vpop.permute.xlu0 %1222  ;;  %v4084_v41 = vpop.permute.xlu1 %1439 }
 0x279   :  { %1963 = vperm.xlu1 %3137, %v1614_v20   ;;  %1888 = vperm.xlu0 %3136, %v1589_v61   ;;  %4910 = vst [vmem:[#allocation17_spill] sm:$0xff] %v4084_v41  ;;  %v1591_v42 = vmul.f32 %v4078_v14, %v3912_v62  ;;  %v1622_v38 = vmul.f32 %v4084_v41, %v3912_v62 }
 0x27c   :  { %v4086_v53 = vpop.permute.xlu0 %1236  ;;  %v4096_v9 = vpop.permute.xlu1 %1453 }
 0x27d   :  { %1969 = vperm.xlu1 %3137, %v1616_v27   ;;  %1894 = vperm.xlu0 %3136, %v1591_v42   ;;  %v1593_v60 = vmul.f32 %v4086_v53, %v3912_v62  ;;  %v1624_v27 = vmul.f32 %v4096_v9, %v3912_v62 }
 0x280   :  { %v4092_v43 = vpop.permute.xlu0 %1250  ;;  %v4106_v15 = vpop.permute.xlu1 %1467 }
 0x281   :  { %1975 = vperm.xlu1 %3137, %v1618_v12   ;;  %1900 = vperm.xlu0 %3136, %v1593_v60   ;;  %v1595_v28 = vmul.f32 %v4092_v43, %v3912_v62 }
 0x284   :  { %v4100_v55 = vpop.permute.xlu0 %1264  ;;  %v4118_v60 = vpop.permute.xlu1 %1481 }
 0x285   :  { %1981 = vperm.xlu1 %3137, %v1620_v31   ;;  %1906 = vperm.xlu0 %3136, %v1595_v28   ;;  %v1597_v61 = vmul.f32 %v4100_v55, %v3912_v62  ;;  %4911 = vst [vmem:[#allocation18_spill] sm:$0xff] %v4118_v60  ;;  %v1626_v31 = vmul.f32 %v4106_v15, %v3912_v62 }
 0x288   :  { %v4108_v20 = vpop.permute.xlu0 %1278  ;;  %v4128_v0 = vpop.permute.xlu1 %1495 }
 0x289   :  { %1987 = vperm.xlu1 %3137, %v1622_v38   ;;  %1912 = vperm.xlu0 %3136, %v1597_v61   ;;  %v1599_v12 = vmul.f32 %v4108_v20, %v3912_v62  ;;  %v1628_v61 = vmul.f32 %v4118_v60, %v3912_v62  ;;  %v1630_v34 = vmul.f32 %v4128_v0, %v3912_v62 }
 0x28c   :  { %v4114_v42 = vpop.permute.xlu0 %1292 }
 0x28d   :  { %1993 = vperm.xlu1 %3137, %v1624_v27   ;;  %1918 = vperm.xlu0 %3136, %v1599_v12   ;;  %v1601_v38 = vmul.f32 %v4114_v42, %v3912_v62  ;;  %v4135_v12 = vmax.f32 %v4018_v25, 0.0 }
 0x28f   :  { %v1632_v21 = vmul.f32 %v3916_v11, %v4135_v12  ;;  %v1636_v11 = vmul.f32 %v3904_v13, %v4135_v12 }
 0x290   :  { %v4122_v28 = vpop.permute.xlu0 %1306 }
 0x291   :  { %1999 = vperm.xlu1 %3137, %v1626_v31   ;;  %1924 = vperm.xlu0 %3136, %v1601_v38   ;;  %v1603_v27 = vmul.f32 %v4122_v28, %v3912_v62 }
 0x294   :  { %v4130_v33 = vpop.permute.xlu0 %1320 }
 0x295   :  { %2005 = vperm.xlu1 %3137, %v1628_v61   ;;  %1930 = vperm.xlu0 %3136, %v1603_v27   ;;  %v1605_v38 = vmul.f32 %v4130_v33, %v3912_v62  ;;  %v1634_v27 = vmul.f32 %v3898_v50, %v4135_v12  ;;  %v1638_v50 = vmul.f32 %v3908_v48, %v4135_v12 }
 0x298   :  { %v4139_v31 = vpop.permute.xlu0 %1334 }
 0x299   :  { %2011 = vperm.xlu1 %3137, %v1630_v34   ;;  %1936 = vperm.xlu0 %3136, %v1605_v38   ;;  %v1607_v25 = vmul.f32 %v4139_v31, %v3912_v62 }
 0x29c   :  { %v4145_v22 = vpop.permute.xlu1 %1825  ;;  %v4147_v61 = vpop.permute.xlu0 %1348 }
 0x29d   :  { %2017 = vperm.xlu1 %3137, %v1632_v21   ;;  %1942 = vperm.xlu0 %3136, %v1607_v25   ;;  %v1609_v34 = vmul.f32 %v4147_v61, %v3912_v62 }
 0x2a0   :  { %v4153_v18 = vpop.permute.xlu1 %1831  ;;  %v4155_v2 = vpop.permute.xlu0 %1362 }
 0x2a1   :  { %2023 = vperm.xlu1 %3137, %v1634_v27   ;;  %1948 = vperm.xlu0 %3136, %v1609_v34   ;;  %v1611_v21 = vmul.f32 %v4155_v2, %v3912_v62  ;;  %v1640_v27 = vmul.f32 %v3920_v54, %v4135_v12 }
 0x2a4   :  { %v4161_v38 = vpop.permute.xlu1 %1837  ;;  %v4163_v41 = vpop.permute.xlu0 %1376 }
 0x2a5   :  { %4912 = vst [vmem:[#allocation19_spill] sm:$0xff] %v4163_v41  ;;  %2029 = vperm.xlu1 %3137, %v1636_v11   ;;  %1954 = vperm.xlu0 %3136, %v1611_v21   ;;  %v1613_v13 = vmul.f32 %v4163_v41, %v3912_v62  ;;  %v1642_v11 = vmul.f32 %v3926_v39, %v4135_v12 }
 0x2a8   :  { %v4169_v25 = vpop.permute.xlu1 %1843  ;;  %v4171_v60 = vpop.permute.xlu0 %1390 }
 0x2a9   :  { %2035 = vperm.xlu1 %3137, %v1638_v50   ;;  %1960 = vperm.xlu0 %3136, %v1613_v13   ;;  %v1615_v48 = vmul.f32 %v4171_v60, %v3912_v62  ;;  %v1644_v50 = vmul.f32 %v3932_v40, %v4135_v12 }
 0x2ac   :  { %v4177_v34 = vpop.permute.xlu1 %1849  ;;  %v4179_v58 = vpop.permute.xlu0 %1404 }
 0x2ad   :  { %4913 = vst [vmem:[#allocation20_spill] sm:$0xff] %v4177_v34  ;;  %2041 = vperm.xlu1 %3137, %v1640_v27   ;;  %1966 = vperm.xlu0 %3136, %v1615_v48   ;;  %v1617_v54 = vmul.f32 %v4179_v58, %v3912_v62  ;;  %v1646_v27 = vmul.f32 %v3938_v26, %v4135_v12 }
 0x2b0   :  { %v4185_v21 = vpop.permute.xlu1 %1855  ;;  %v4187_v41 = vpop.permute.xlu0 %1418 }
 0x2b1   :  { %4914 = vst [vmem:[#allocation21_spill] sm:$0xff] %v4185_v21  ;;  %2047 = vperm.xlu1 %3137, %v1642_v11   ;;  %1972 = vperm.xlu0 %3136, %v1617_v54   ;;  %v1619_v39 = vmul.f32 %v4187_v41, %v3912_v62  ;;  %v1648_v11 = vmul.f32 %v3944_v1, %v4135_v12 }
 0x2b4   :  { %v4193_v13 = vpop.permute.xlu1 %1861  ;;  %v4195_v34 = vpop.permute.xlu0 %1432 }
 0x2b5   :  { %4915 = vst [vmem:[#allocation22_spill] sm:$0xff] %v4193_v13  ;;  %2053 = vperm.xlu1 %3137, %v1644_v50   ;;  %1978 = vperm.xlu0 %3136, %v1619_v39   ;;  %v1621_v40 = vmul.f32 %v4195_v34, %v3912_v62  ;;  %v1650_v50 = vmul.f32 %v3950_v46, %v4135_v12 }
 0x2b8   :  { %v4201_v48 = vpop.permute.xlu1 %1867  ;;  %v4203_v21 = vpop.permute.xlu0 %1446 }
 0x2b9   :  { %4916 = vst [vmem:[#allocation23_spill] sm:$0xff] %v4201_v48  ;;  %4917 = vst [vmem:[#allocation24_spill] sm:$0xff] %v4203_v21  ;;  %2059 = vperm.xlu1 %3137, %v1646_v27   ;;  %1984 = vperm.xlu0 %3136, %v1621_v40   ;;  %v1623_v26 = vmul.f32 %v4203_v21, %v3912_v62  ;;  %v1652_v27 = vmul.f32 %v3956_v45, %v4135_v12 }
 0x2bc   :  { %v4209_v54 = vpop.permute.xlu1 %1873  ;;  %v4211_v13 = vpop.permute.xlu0 %1460 }
 0x2bd   :  { %2065 = vperm.xlu1 %3137, %v1648_v11   ;;  %1990 = vperm.xlu0 %3136, %v1623_v26   ;;  %v1625_v1 = vmul.f32 %v4211_v13, %v3912_v62  ;;  %v1654_v11 = vmul.f32 %v3962_v23, %v4135_v12  ;;  %v1658_v23 = vmul.f32 %v3974_v36, %v4135_v12 }
 0x2be   :  { %v1635_v36 = vmul.f32 %v3986_v63, %v4135_v12  ;;  %v1639_v63 = vmul.f32 %v4008_v35, %v4135_v12 }
 0x2c0   :  { %v4217_v39 = vpop.permute.xlu1 %1879  ;;  %v4219_v48 = vpop.permute.xlu0 %1474 }
 0x2c1   :  { %4918 = vst [vmem:[#allocation25_spill] sm:$0xff] %v4219_v48  ;;  %2071 = vperm.xlu1 %3137, %v1650_v50   ;;  %1996 = vperm.xlu0 %3136, %v1625_v1   ;;  %v1627_v46 = vmul.f32 %v4219_v48, %v3912_v62  ;;  %v1656_v1 = vmul.f32 %v3968_v56, %v4135_v12 }
 0x2c2   :  { %v1660_v56 = vmul.f32 %v3980_v32, %v4135_v12  ;;  %v1637_v32 = vmul.f32 %v3996_v7, %v4135_v12  ;;  %v1641_v7 = vmul.f32 %v4026_v17, %v4135_v12 }
 0x2c4   :  { %v4225_v40 = vpop.permute.xlu1 %1885  ;;  %v4227_v21 = vpop.permute.xlu0 %1488 }
 0x2c5   :  { %4919 = vst [vmem:[#allocation26_spill] sm:$0xff] %v4225_v40  ;;  %2077 = vperm.xlu1 %3137, %v1652_v27   ;;  %2002 = vperm.xlu0 %3136, %v1627_v46   ;;  %v1629_v50 = vmul.f32 %v4227_v21, %v3912_v62 }
 0x2c8   :  { %v4233_v26 = vpop.permute.xlu1 %1891  ;;  %v4237_v45 = vpop.permute.xlu0 %1502 }
 0x2c9   :  { %2083 = vperm.xlu1 %3137, %v1654_v11   ;;  %2008 = vperm.xlu0 %3136, %v1629_v50   ;;  %v1631_v27 = vmul.f32 %v4237_v45, %v3912_v62  ;;  %v1633_v11 = vmul.f32 %v3892_v4, %v4135_v12 }
 0x2cc   :  { %v4241_v40 = vpop.permute.xlu1 %1897 }
 0x2cd   :  { %2089 = vperm.xlu1 %3137, %v1656_v1   ;;  %2014 = vperm.xlu0 %3136, %v1631_v27   ;;  %v1662_v1 = vmul.f32 %v3988_v44, %v4135_v12  ;;  %v1672_v44 = vmul.f32 %v4024_v29, %v4135_v12 }
 0x2d0   :  { %v4247_v46 = vpop.permute.xlu1 %1903  ;;  %v4249_v48 = vpop.permute.xlu0 %1828 }
 0x2d1   :  { %2095 = vperm.xlu1 %3137, %v1658_v23   ;;  %2020 = vperm.xlu0 %3136, %v1633_v11   ;;  %v1665_v23 = vmul.f32 %v4114_v42, %v4135_v12 }
 0x2d4   :  { %v4255_v50 = vpop.permute.xlu1 %1909  ;;  %v4257_v62 = vpop.permute.xlu0 %1834 }
 0x2d5   :  { %2101 = vperm.xlu1 %3137, %v1660_v56   ;;  %2026 = vperm.xlu0 %3136, %v1635_v36  }
 0x2d8   :  { %v4263_v27 = vpop.permute.xlu1 %1915  ;;  %v4265_v4 = vpop.permute.xlu0 %1840 }
 0x2d9   :  { %2107 = vperm.xlu1 %3137, %v1662_v1   ;;  %2032 = vperm.xlu0 %3136, %v1637_v32   ;;  %v1667_v1 = vmul.f32 %v4122_v28, %v4135_v12  ;;  %v1643_v32 = vmul.f32 %v4032_v8, %v4135_v12 }
 0x2dc   :  { %v4271_v11 = vpop.permute.xlu1 %1921  ;;  %v4275_v56 = vpop.permute.xlu0 %1846 }
 0x2dd   :  { %2116 = vperm.xlu1 %3137, %v1665_v23   ;;  %2038 = vperm.xlu0 %3136, %v1639_v63   ;;  %v1680_v23 = vmul.f32 %v4054_v5, %v4135_v12  ;;  %v1645_v63 = vmul.f32 %v4040_v6, %v4135_v12 }
 0x2e0   :  { %v4279_v36 = vpop.permute.xlu1 %1927  ;;  %v4283_v42 = vpop.permute.xlu0 %1852 }
 0x2e1   :  { %2137 = vperm.xlu1 %3137, %v1672_v44   ;;  %2044 = vperm.xlu0 %3136, %v1641_v7   ;;  %v1668_v44 = vmul.f32 %v4010_v52, %v4135_v12  ;;  %v1647_v7 = vmul.f32 %v4048_v3, %v4135_v12 }
 0x2e4   :  { %v4287_v35 = vpop.permute.xlu1 %1933  ;;  %v4291_v29 = vpop.permute.xlu0 %1858 }
 0x2e5   :  { %2122 = vperm.xlu1 %3137, %v1667_v1   ;;  %2050 = vperm.xlu0 %3136, %v1643_v32   ;;  %v1682_v1 = vmul.f32 %v4062_v37, %v4135_v12  ;;  %v1649_v32 = vmul.f32 %v4056_v16, %v4135_v12 }
 0x2e8   :  { %v4295_v17 = vpop.permute.xlu1 %1939  ;;  %v4299_v28 = vpop.permute.xlu0 %1864 }
 0x2e9   :  { %2161 = vperm.xlu1 %3137, %v1680_v23   ;;  %2056 = vperm.xlu0 %3136, %v1645_v63   ;;  %v1689_v23 = vmul.f32 %v4211_v13, %v4135_v12  ;;  %v1651_v63 = vmul.f32 %v4064_v59, %v4135_v12 }
 0x2ec   :  { %v4303_v8 = vpop.permute.xlu1 %1945  ;;  %v4307_v5 = vpop.permute.xlu0 %1870 }
 0x2ed   :  { %2125 = vperm.xlu1 %3137, %v1668_v44   ;;  %4920 = vst [vmem:[#allocation27_spill] sm:$0xff] %v4307_v5  ;;  %2062 = vperm.xlu0 %3136, %v1647_v7   ;;  %v1676_v44 = vmul.f32 %v4038_v30, %v4135_v12  ;;  %v1653_v7 = vmul.f32 %v4070_v57, %v4135_v12 }
 0x2f0   :  { %v4311_v6 = vpop.permute.xlu1 %1951  ;;  %v4315_v52 = vpop.permute.xlu0 %1876 }
 0x2f1   :  { %2167 = vperm.xlu1 %3137, %v1682_v1   ;;  %2068 = vperm.xlu0 %3136, %v1649_v32   ;;  %v1690_v1 = vmul.f32 %v4106_v15, %v4135_v12  ;;  %v1655_v32 = vmul.f32 %v4078_v14, %v4135_v12 }
 0x2f4   :  { %v4319_v3 = vpop.permute.xlu1 %1957  ;;  %v4323_v37 = vpop.permute.xlu0 %1882 }
 0x2f5   :  { %2188 = vperm.xlu1 %3137, %v1689_v23   ;;  %2074 = vperm.xlu0 %3136, %v1651_v63   ;;  %v1670_v23 = vmul.f32 %v4016_v19, %v4135_v12  ;;  %v1657_v63 = vmul.f32 %v4086_v53, %v4135_v12 }
 0x2f8   :  { %v4327_v16 = vpop.permute.xlu1 %1963  ;;  %v4331_v13 = vpop.permute.xlu0 %1888 }
 0x2f9   :  { %2149 = vperm.xlu1 %3137, %v1676_v44   ;;  %2080 = vperm.xlu0 %3136, %v1653_v7   ;;  %v1684_v44 = vmul.f32 %v4074_v24, %v4135_v12  ;;  %v1659_v7 = vmul.f32 %v4092_v43, %v4135_v12 }
 0x2fc   :  { %v4335_v59 = vpop.permute.xlu1 %1969  ;;  %v4339_v30 = vpop.permute.xlu0 %1894 }
 0x2fd   :  { %2191 = vperm.xlu1 %3137, %v1690_v1   ;;  %2086 = vperm.xlu0 %3136, %v1655_v32   ;;  %v1671_v1 = vmul.f32 %v4139_v31, %v4135_v12  ;;  %v1661_v32 = vmul.f32 %v4100_v55, %v4135_v12 }
 0x300   :  { %v4343_v57 = vpop.permute.xlu1 %1975  ;;  %v4347_v15 = vpop.permute.xlu0 %1900 }
 0x301   :  { %2131 = vperm.xlu1 %3137, %v1670_v23   ;;  %2092 = vperm.xlu0 %3136, %v1657_v63   ;;  %v1685_v23 = vmul.f32 %v4195_v34, %v4135_v12  ;;  %v1664_v63 = vmul.f32 %v3994_v51, %v4135_v12 }
 0x304   :  { %v4351_v14 = vpop.permute.xlu1 %1981  ;;  %v4355_v19 = vpop.permute.xlu0 %1906 }
 0x305   :  { %2173 = vperm.xlu1 %3137, %v1684_v44   ;;  %2098 = vperm.xlu0 %3136, %v1659_v7   ;;  %v1679_v44 = vmul.f32 %v4171_v60, %v4135_v12  ;;  %v1666_v7 = vmul.f32 %v4002_v47, %v4135_v12 }
 0x308   :  { %v4359_v53 = vpop.permute.xlu1 %1987  ;;  %v4363_v24 = vpop.permute.xlu0 %1912 }
 0x309   :  { %2134 = vperm.xlu1 %3137, %v1671_v1   ;;  %2104 = vperm.xlu0 %3136, %v1661_v32   ;;  %v1693_v1 = vmul.f32 %v4227_v21, %v4135_v12  ;;  %v1673_v32 = vmul.f32 %v4147_v61, %v4135_v12  ;;  %v1681_v61 = vmul.f32 %v4179_v58, %v4135_v12 }
 0x30c   :  { %v4367_v43 = vpop.permute.xlu1 %1993  ;;  %v4371_v31 = vpop.permute.xlu0 %1918 }
 0x30d   :  { %2176 = vperm.xlu1 %3137, %v1685_v23   ;;  %2113 = vperm.xlu0 %3136, %v1664_v63   ;;  %v1694_v23 = vmul.f32 %v4128_v0, %v4135_v12  ;;  %v1674_v63 = vmul.f32 %v4030_v10, %v4135_v12  ;;  %v1675_v0 = vmul.f32 %v4155_v2, %v4135_v12 }
 0x30e   :  { %v1669_v2 = vmul.f32 %v4130_v33, %v4135_v12  ;;  %v2275_v33 = vrot.slane %v4209_v54, %v3578_v49  ;;  %v2311_v54 = vrot.slane %v4347_v15, %v3578_v49 }
 0x310   :  { %v4375_v55 = vpop.permute.xlu1 %1999  ;;  %v4379_v34 = vpop.permute.xlu0 %1924 }
 0x311   :  { %2158 = vperm.xlu1 %3137, %v1679_v44   ;;  %2119 = vperm.xlu0 %3136, %v1666_v7  }
 0x314   :  { %v4383_v51 = vpop.permute.xlu1 %2005  ;;  %v4387_v60 = vpop.permute.xlu0 %1930 }
 0x315   :  { %2200 = vperm.xlu1 %3137, %v1693_v1   ;;  %2140 = vperm.xlu0 %3136, %v1673_v32  }
 0x318   :  { %v4391_v47 = vpop.permute.xlu1 %2011  ;;  %v4395_v21 = vpop.permute.xlu0 %1936 }
 0x319   :  { %2203 = vperm.xlu1 %3137, %v1694_v23   ;;  %2143 = vperm.xlu0 %3136, %v1674_v63   ;;  %v1688_v23 = vmul.f32 %v4096_v9, %v4135_v12  ;;  %v2215_v63 = vrot.slane %v4249_v48, %v3578_v49  ;;  %v2219_v48 = vrot.slane %v4153_v18, %v3578_v49 }
 0x31a   :  { %v2231_v18 = vrot.slane %v4265_v4, %v3578_v49  ;;  %v1663_v4 = vmul.f32 %v4108_v20, %v4135_v12  ;;  %v2295_v20 = vrot.slane %v4331_v13, %v3578_v49  ;;  %v4924_v13 = vld [vmem:[#allocation19_spill] sm:$0xff] }
 0x31c   :  { %v4397_v44 = vpop.permute.xlu1 %2017  ;;  %v4401_v7 = vpop.permute.xlu0 %1942 }
 0x31d   :  { %2164 = vperm.xlu0 %3136, %v1681_v61   ;;  %v2211_v61 = vrot.slane %v4145_v22, %v3578_v49 }
 0x320   :  { %v4403_v1 = vpop.permute.xlu1 %2023  ;;  %v4407_v32 = vpop.permute.xlu0 %1948 }
 0x321   :  { %2146 = vperm.xlu0 %3136, %v1675_v0   ;;  %v2720_v0 = vsel %vm1028_vm8, %v2215_v63, %v2211_v61 }
 0x322   :  { %v2721_v63 = vsel %vm1030_vm9, %v2219_v48, %v2720_v0 }
 0x324   :  { %v4409_v10 = vpop.permute.xlu1 %2029  ;;  %v4415_v58 = vpop.permute.xlu0 %1954 }
 0x325   :  { %4921 = vst [vmem:[#allocation28_spill] sm:$0xff] %v4409_v10  ;;  %2185 = vperm.xlu0 %3136, %v1688_v23   ;;  %v2223_v10 = vrot.slane %v4257_v62, %v3578_v49  ;;  %v2279_v23 = vrot.slane %v4315_v52, %v3578_v49  ;;  %v2227_v52 = vrot.slane %v4161_v38, %v3578_v49 }
 0x326   :  { %v2307_v38 = vrot.slane %v4241_v40, %v3578_v49 }
 0x327   :  { %v2722_v62 = vsel %vm1032_vm10, %v2223_v10, %v2721_v63  ;;  %v2283_v10 = vrot.slane %v4217_v39, %v3578_v49 }
 0x328   :  { %v4419_v5 = vpop.permute.xlu1 %2035  ;;  %v4426_v9 = vpop.permute.xlu0 %1960  ;;  %v2724_v48 = vsel %vm2723_vm12, %v2227_v52, %v2722_v62  ;;  %v2745_v40 = vsel %vm1028_vm8, %v2311_v54, %v2307_v38  ;;  %v2315_v62 = vrot.slane %v4247_v46, %v3578_v49  ;;  %v2343_v52 = vrot.slane %v4379_v34, %v3578_v49 }
 0x329   :  { %4922 = vst [vmem:[#allocation29_spill] sm:$0xff] %v4419_v5  ;;  %2128 = vperm.xlu0 %3136, %v1669_v2   ;;  %v1683_v5 = vmul.f32 %v4187_v41, %v4135_v12  ;;  %v2738_v2 = vsel %vm1028_vm8, %v2279_v23, %v2275_v33  ;;  %v2287_v41 = vrot.slane %v4323_v37, %v3578_v49 }
 0x32a   :  { %v2235_v37 = vrot.slane %v4169_v25, %v3578_v49  ;;  %v2726_v15 = vsel %vm2725_vm13, %v2231_v18, %v2724_v48  ;;  %v2319_v33 = vrot.slane %v4355_v19, %v3578_v49  ;;  %v4923_v25 = vld [vmem:[#allocation26_spill] sm:$0xff]  ;;  %v2239_v18 = vrot.slane %v4275_v56, %v3578_v49 }
 0x32b   :  { %v2291_v63 = vrot.slane %v4923_v25, %v3578_v49  ;;  %v2299_v19 = vrot.slane %v4233_v26, %v3578_v49  ;;  %v2323_v54 = vrot.slane %v4255_v50, %v3578_v49  ;;  %v2339_v46 = vrot.slane %v4271_v11, %v3578_v49 }
 0x32c   :  { %v4432_v22 = vpop.permute.xlu1 %2041  ;;  %v4442_v61 = vpop.permute.xlu0 %1966  ;;  %v2303_v26 = vrot.slane %v4339_v30, %v3578_v49  ;;  %v2327_v50 = vrot.slane %v4363_v24, %v3578_v49  ;;  %v4926_v30 = vld [vmem:[#allocation25_spill] sm:$0xff]  ;;  %v2347_v24 = vrot.slane %v4279_v36, %v3578_v49  ;;  %v2331_v25 = vrot.slane %v4263_v27, %v3578_v49 }
 0x32d   :  { %2170 = vperm.xlu0 %3136, %v1683_v5   ;;  %v2739_v5 = vsel %vm1030_vm9, %v2283_v10, %v2738_v2  ;;  %v2746_v10 = vsel %vm1030_vm9, %v2315_v62, %v2745_v40  ;;  %v2752_v11 = vsel %vm1028_vm8, %v2343_v52, %v2339_v46  ;;  %v1691_v40 = vmul.f32 %v4926_v30, %v4135_v12 }
 0x32e   :  { %v2740_v39 = vsel %vm1032_vm10, %v2287_v41, %v2739_v5  ;;  %v1677_v41 = vmul.f32 %v4924_v13, %v4135_v12  ;;  %v2747_v48 = vsel %vm1032_vm10, %v2319_v33, %v2746_v10  ;;  %v2351_v5 = vrot.slane %v4387_v60, %v3578_v49 }
 0x32f   :  { %v2741_v56 = vsel %vm2723_vm12, %v2291_v63, %v2740_v39  ;;  %v2375_v39 = vrot.slane %v4407_v32, %v3578_v49  ;;  %v2371_v60 = vrot.slane %v4303_v8, %v3578_v49  ;;  %v2748_v32 = vsel %vm2723_vm12, %v2323_v54, %v2747_v48 }
 0x330   :  { %v4453_v0 = vpop.permute.xlu1 %2047  ;;  %v4464_v23 = vpop.permute.xlu0 %1972  ;;  %v2742_v38 = vsel %vm2725_vm13, %v2295_v20, %v2741_v56  ;;  %v2753_v52 = vsel %vm1030_vm9, %v2347_v24, %v2752_v11  ;;  %v2359_v8 = vrot.slane %v4395_v21, %v3578_v49  ;;  %v2383_v54 = vrot.slane %v4415_v58, %v3578_v49  ;;  %v4927_v21 = vld [vmem:[#allocation18_spill] sm:$0xff] }
 0x331   :  { %2110 = vperm.xlu0 %3136, %v1663_v4   ;;  %v2728_v4 = vsel %vm2727_vm14, %v2235_v37, %v2726_v15  ;;  %v4925_v15 = vld [vmem:[#allocation16_spill] sm:$0xff]  ;;  %v2743_v62 = vsel %vm2727_vm14, %v2299_v19, %v2742_v38  ;;  %v2754_v27 = vsel %vm1032_vm10, %v2351_v5, %v2753_v52  ;;  %v2355_v19 = vrot.slane %v4287_v35, %v3578_v49 }
 0x332   :  { %v2730_v37 = vsel %vm2729_vm15, %v2239_v18, %v2728_v4  ;;  %v1678_v20 = vmul.f32 %v4925_v15, %v4135_v12  ;;  %v2749_v18 = vsel %vm2725_vm13, %v2327_v50, %v2748_v32  ;;  %v2744_v13 = vsel %vm2729_vm15, %v2303_v26, %v2743_v62 }
 0x333   :  { %v2853_v36 = vsel %vm2852_vm0, %v2730_v37, 0.0  ;;  %v2379_v46 = vrot.slane %v4311_v6, %v3578_v49  ;;  %v2335_v56 = vrot.slane %v4371_v31, %v3578_v49  ;;  %v2407_v10 = vrot.slane %v4464_v23, %v3578_v49 }
 0x334   :  { %v4480_v2 = vpop.permute.xlu1 %2053  ;;  %v4492_v34 = vpop.permute.xlu0 %1978  ;;  %v1692_v4 = vmul.f32 %v4927_v21, %v4135_v12  ;;  %v2363_v38 = vrot.slane %v4295_v17, %v3578_v49  ;;  %v2403_v58 = vrot.slane %v4335_v59, %v3578_v49  ;;  %v2755_v6 = vsel %vm2723_vm12, %v2355_v19, %v2754_v27 }
 0x335   :  { %2152 = vperm.xlu0 %3136, %v1677_v41   ;;  %v2759_v41 = vsel %vm1028_vm8, %v2375_v39, %v2371_v60  ;;  %v2859_v23 = vsel %vm2852_vm0, %v2744_v13, 0.0  ;;  %v2750_v48 = vsel %vm2727_vm14, %v2331_v25, %v2749_v18  ;;  %v2756_v50 = vsel %vm2725_vm13, %v2359_v8, %v2755_v6 }
 0x336   :  { %v2760_v26 = vsel %vm1030_vm9, %v2379_v46, %v2759_v41  ;;  %v2367_v17 = vrot.slane %v4401_v7, %v3578_v49  ;;  %v2391_v11 = vrot.slane %v4426_v9, %v3578_v49  ;;  %v2387_v5 = vrot.slane %v4319_v3, %v3578_v49  ;;  %v4929_v41 = vld [vmem:[#allocation24_spill] sm:$0xff] }
 0x337   :  { %v2761_v59 = vsel %vm1032_vm10, %v2383_v54, %v2760_v26  ;;  %v2766_v39 = vsel %vm1028_vm8, %v2407_v10, %v2403_v58  ;;  %v2415_v37 = vrot.slane %v4492_v34, %v3578_v49  ;;  %v2751_v15 = vsel %vm2729_vm15, %v2335_v56, %v2750_v48 }
 0x338   :  { %v4513_v33 = vpop.permute.xlu1 %2059  ;;  %v4520_v63 = vpop.permute.xlu0 %1984  ;;  %v2411_v7 = vrot.slane %v4343_v57, %v3578_v49  ;;  %v2435_v9 = vrot.slane %v4367_v43, %v3578_v49  ;;  %v2762_v3 = vsel %vm2723_vm12, %v2387_v5, %v2761_v59  ;;  %v2757_v34 = vsel %vm2727_vm14, %v2363_v38, %v2756_v50 }
 0x339   :  { %2194 = vperm.xlu0 %3136, %v1691_v40   ;;  %v2763_v25 = vsel %vm2725_vm13, %v2391_v11, %v2762_v3  ;;  %v2862_v32 = vsel %vm2852_vm0, %v2751_v15, 0.0  ;;  %v2758_v62 = vsel %vm2729_vm15, %v2367_v17, %v2757_v34  ;;  %v2399_v57 = vrot.slane %v4442_v61, %v3578_v49 }
 0x33a   :  { %v2767_v60 = vsel %vm1030_vm9, %v2411_v7, %v2766_v39  ;;  %v2423_v18 = vrot.slane %v4520_v63, %v3578_v49  ;;  %v2395_v13 = vrot.slane %v4327_v16, %v3578_v49  ;;  %v2419_v27 = vrot.slane %v4351_v14, %v3578_v49 }
 0x33b   :  { %v2768_v43 = vsel %vm1032_vm10, %v2415_v37, %v2767_v60  ;;  %v2443_v8 = vrot.slane %v4375_v55, %v3578_v49  ;;  %v1687_v54 = vmul.f32 %v4929_v41, %v4135_v12  ;;  %v2865_v56 = vsel %vm2852_vm0, %v2758_v62, 0.0 }
 0x33c   :  { %v4547_v35 = vpop.permute.xlu0 %1990  ;;  %v4551_v31 = vpop.permute.xlu1 %2065  ;;  %v2769_v19 = vsel %vm2723_vm12, %v2419_v27, %v2768_v43  ;;  %v2764_v16 = vsel %vm2727_vm14, %v2395_v13, %v2763_v25  ;;  %v2451_v38 = vrot.slane %v4383_v51, %v3578_v49  ;;  %v1695_v50 = vmul.f32 %v4237_v45, %v4135_v12  ;;  %v4931_v25 = vld [vmem:[#allocation21_spill] sm:$0xff] }
 0x33d   :  { %2854 = vadd.xlane.f32.xlu1 %v2853_v36  ;;  %2155 = vperm.xlu0 %3136, %v1678_v20   ;;  %v4928_v20 = vld [vmem:[#allocation17_spill] sm:$0xff]  ;;  %v2770_v14 = vsel %vm2725_vm13, %v2423_v18, %v2769_v19  ;;  %v2431_v55 = vrot.slane %v4547_v35, %v3578_v49  ;;  %v2765_v21 = vsel %vm2729_vm15, %v2399_v57, %v2764_v16 }
 0x33e   :  { %v1686_v30 = vmul.f32 %v4928_v20, %v4135_v12  ;;  %v2868_v35 = vsel %vm2852_vm0, %v2765_v21, 0.0  ;;  %v2459_v17 = vrot.slane %v4391_v47, %v3578_v49  ;;  %v2247_v47 = vrot.slane %v4283_v42, %v3578_v49 }
 0x33f   :  { %v2251_v60 = vrot.slane %v4931_v25, %v3578_v49  ;;  %v2467_v42 = vrot.slane %v4397_v44, %v3578_v49  ;;  %v2263_v18 = vrot.slane %v4299_v28, %v3578_v49  ;;  %v2499_v28 = vrot.slane %v4432_v22, %v3578_v49 }
 0x340   :  { %v1997_v40 = vpop.permute.xlu0 %1996  ;;  %v4585_v52 = vpop.permute.xlu1 %2071 }
 0x341   :  { %2860 = vadd.xlane.f32.xlu1 %v2859_v23  ;;  %v2439_v24 = vrot.slane %v1997_v40, %v3578_v49  ;;  %2197 = vperm.xlu0 %3136, %v1692_v4   ;;  %v2427_v4 = vrot.slane %v4359_v53, %v3578_v49  ;;  %v4930_v40 = vld [vmem:[#allocation20_spill] sm:$0xff] }
 0x343   :  { %v2773_v36 = vsel %vm1028_vm8, %v2439_v24, %v2435_v9  ;;  %v2771_v48 = vsel %vm2727_vm14, %v2427_v4, %v2770_v14  ;;  %v2243_v9 = vrot.slane %v4930_v40, %v3578_v49  ;;  %v2255_v24 = vrot.slane %v4291_v29, %v3578_v49  ;;  %v4932_v29 = vld [vmem:[#allocation22_spill] sm:$0xff]  ;;  %v4935_v4 = vld [vmem:[#allocation28_spill] sm:$0xff] }
 0x344   :  { %v2003_v61 = vpop.permute.xlu0 %2002  ;;  %v2774_v46 = vsel %vm1030_vm9, %v2443_v8, %v2773_v36  ;;  %v4610_v6 = vpop.permute.xlu1 %2077  ;;  %v2772_v51 = vsel %vm2729_vm15, %v2431_v55, %v2771_v48  ;;  %v2259_v36 = vrot.slane %v4932_v29, %v3578_v49  ;;  %v2483_v22 = vrot.slane %v4935_v4, %v3578_v49 }
 0x345   :  { %2863 = vadd.xlane.f32.xlu1 %v2862_v32  ;;  %v2447_v63 = vrot.slane %v2003_v61, %v3578_v49  ;;  %2179 = vperm.xlu0 %3136, %v1686_v30   ;;  %v2871_v5 = vsel %vm2852_vm0, %v2772_v51, 0.0  ;;  %v2731_v3 = vsel %vm1028_vm8, %v2247_v47, %v2243_v9  ;;  %v2475_v61 = vrot.slane %v4403_v1, %v3578_v49 }
 0x346   :  { %v2732_v57 = vsel %vm1030_vm9, %v2251_v60, %v2731_v3  ;;  %v2523_v40 = vrot.slane %v4513_v33, %v3578_v49 }
 0x347   :  { %v2775_v10 = vsel %vm1032_vm10, %v2447_v63, %v2774_v46  ;;  %v2733_v43 = vsel %vm1032_vm10, %v2255_v24, %v2732_v57  ;;  %v4933_v46 = vld [vmem:[#allocation27_spill] sm:$0xff] }
 0x348   :  { %v2009_v58 = vpop.permute.xlu0 %2008  ;;  %v2776_v23 = vsel %vm2723_vm12, %v2451_v38, %v2775_v10  ;;  %v4625_v37 = vpop.permute.xlu1 %2083  ;;  %v4934_v10 = vld [vmem:[#allocation23_spill] sm:$0xff]  ;;  %v2507_v38 = vrot.slane %v4453_v0, %v3578_v49  ;;  %v4936_v0 = vld [vmem:[#allocation29_spill] sm:$0xff] }
 0x349   :  { %2866 = vadd.xlane.f32.xlu1 %v2865_v56  ;;  %v2455_v26 = vrot.slane %v2009_v58, %v3578_v49  ;;  %2182 = vperm.xlu0 %3136, %v1687_v54   ;;  %v2734_v54 = vsel %vm2723_vm12, %v2259_v36, %v2733_v43  ;;  %v2271_v56 = vrot.slane %v4933_v46, %v3578_v49 }
 0x34a   :  { %v2735_v63 = vsel %vm2725_vm13, %v2263_v18, %v2734_v54  ;;  %v2267_v21 = vrot.slane %v4934_v10, %v3578_v49  ;;  %v2539_v43 = vrot.slane %v4585_v52, %v3578_v49  ;;  %v2555_v52 = vrot.slane %v4625_v37, %v3578_v49 }
 0x34b   :  { %v2777_v53 = vsel %vm2725_vm13, %v2455_v26, %v2776_v23 }
 0x34c   :  { %v2015_v59 = vpop.permute.xlu0 %2014  ;;  %v2778_v39 = vsel %vm2727_vm14, %v2459_v17, %v2777_v53  ;;  %v4629_v30 = vpop.permute.xlu1 %2089  ;;  %v2736_v48 = vsel %vm2727_vm14, %v2267_v21, %v2735_v63 }
 0x34d   :  { %2869 = vadd.xlane.f32.xlu1 %v2868_v35  ;;  %v2463_v11 = vrot.slane %v2015_v59, %v3578_v49  ;;  %2206 = vperm.xlu0 %3136, %v1695_v50   ;;  %v2737_v59 = vsel %vm2729_vm15, %v2271_v56, %v2736_v48 }
 0x34f   :  { %v2779_v12 = vsel %vm2729_vm15, %v2463_v11, %v2778_v39  ;;  %v2491_v11 = vrot.slane %v4936_v0, %v3578_v49  ;;  %v2563_v0 = vrot.slane %v4629_v30, %v3578_v49 }
 0x350   :  { %v2021_v45 = vpop.permute.xlu0 %2020  ;;  %v2874_v15 = vsel %vm2852_vm0, %v2779_v12, 0.0  ;;  %v4638_v34 = vpop.permute.xlu1 %2095 }
 0x351   :  { %2872 = vadd.xlane.f32.xlu1 %v2871_v5  ;;  %v2471_v32 = vrot.slane %v2021_v45, %v3578_v49  ;;  %v2515_v5 = vrot.slane %v4480_v2, %v3578_v49  ;;  %v2856_v45 = vsel %vm2852_vm0, %v2737_v59, 0.0 }
 0x353   :  { %v2780_v13 = vsel %vm1028_vm8, %v2471_v32, %v2467_v42  ;;  %v2531_v32 = vrot.slane %v4551_v31, %v3578_v49  ;;  %v2547_v31 = vrot.slane %v4610_v6, %v3578_v49 }
 0x354   :  { %v2027_v20 = vpop.permute.xlu0 %2026  ;;  %v4655_v41 = vpop.permute.xlu1 %2101  ;;  %v2781_v19 = vsel %vm1030_vm9, %v2475_v61, %v2780_v13 }
 0x355   :  { %2875 = vadd.xlane.f32.xlu1 %v2874_v15  ;;  %v2479_v27 = vrot.slane %v2027_v20, %v3578_v49 }
 0x357   :  { %v2782_v16 = vsel %vm1032_vm10, %v2479_v27, %v2781_v19 }
 0x358   :  { %v2033_v7 = vpop.permute.xlu0 %2032  ;;  %v4675_v26 = vpop.permute.xlu1 %2107  ;;  %v2783_v23 = vsel %vm2723_vm12, %v2483_v22, %v2782_v16 }
 0x359   :  { %v2487_v1 = vrot.slane %v2033_v7, %v3578_v49 }
 0x35b   :  { %v2784_v50 = vsel %vm2725_vm13, %v2487_v1, %v2783_v23 }
 0x35c   :  { %v2039_v62 = vpop.permute.xlu0 %2038  ;;  %v2785_v15 = vsel %vm2727_vm14, %v2491_v11, %v2784_v50  ;;  %v2117_v9 = vpop.permute.xlu1 %2116 }
 0x35d   :  { %v2495_v53 = vrot.slane %v2039_v62, %v3578_v49  ;;  %v2599_v11 = vrot.slane %v2117_v9, %v3578_v49 }
 0x35f   :  { %v2786_v7 = vsel %vm2729_vm15, %v2495_v53, %v2785_v15 }
 0x360   :  { %v2045_v8 = vpop.permute.xlu0 %2044  ;;  %v2877_v3 = vsel %vm2852_vm0, %v2786_v7, 0.0  ;;  %v4703_v57 = vpop.permute.xlu1 %2137 }
 0x361   :  { %v2503_v44 = vrot.slane %v2045_v8, %v3578_v49 }
 0x363   :  { %v2787_v14 = vsel %vm1028_vm8, %v2503_v44, %v2499_v28 }
 0x364   :  { %v2051_v55 = vpop.permute.xlu0 %2050  ;;  %v2788_v35 = vsel %vm1030_vm9, %v2507_v38, %v2787_v14  ;;  %v2123_v8 = vpop.permute.xlu1 %2122 }
 0x365   :  { %v2511_v58 = vrot.slane %v2051_v55, %v3578_v49 }
 0x367   :  { %v2789_v51 = vsel %vm1032_vm10, %v2511_v58, %v2788_v35 }
 0x368   :  { %v2057_v17 = vpop.permute.xlu0 %2056  ;;  %v2790_v12 = vsel %vm2723_vm12, %v2515_v5, %v2789_v51  ;;  %v4721_v46 = vpop.permute.xlu1 %2161 }
 0x369   :  { %v2519_v39 = vrot.slane %v2057_v17, %v3578_v49 }
 0x36b   :  { %v2791_v20 = vsel %vm2725_vm13, %v2519_v39, %v2790_v12 }
 0x36c   :  { %2857 = vadd.xlane.f32.xlu0 %v2856_v45  ;;  %v2063_v47 = vpop.permute.xlu0 %2062  ;;  %v2792_v24 = vsel %vm2727_vm14, %v2523_v40, %v2791_v20  ;;  %v2126_v14 = vpop.permute.xlu1 %2125  ;;  %v2571_v45 = vrot.slane %v4638_v34, %v3578_v49  ;;  %v2579_v34 = vrot.slane %v4655_v41, %v3578_v49 }
 0x36d   :  { %v2527_v2 = vrot.slane %v2063_v47, %v3578_v49  ;;  %v2607_v47 = vrot.slane %v2123_v8, %v3578_v49 }
 0x36f   :  { %v2793_v60 = vsel %vm2729_vm15, %v2527_v2, %v2792_v24  ;;  %v2611_v24 = vrot.slane %v2126_v14, %v3578_v49 }
 0x370   :  { %2878 = vadd.xlane.f32.xlu0 %v2877_v3  ;;  %v2069_v25 = vpop.permute.xlu0 %2068  ;;  %v2880_v42 = vsel %vm2852_vm0, %v2793_v60, 0.0  ;;  %v4725_v10 = vpop.permute.xlu1 %2167 }
 0x371   :  { %v2535_v62 = vrot.slane %v2069_v25, %v3578_v49 }
 0x373   :  { %v2794_v33 = vsel %vm1028_vm8, %v2535_v62, %v2531_v32 }
 0x374   :  { %2881 = vadd.xlane.f32.xlu0 %v2880_v42  ;;  %v2075_v18 = vpop.permute.xlu0 %2074  ;;  %v2795_v36 = vsel %vm1030_vm9, %v2539_v43, %v2794_v33  ;;  %v4727_v4 = vpop.permute.xlu1 %2188  ;;  %v2587_v43 = vrot.slane %v4675_v26, %v3578_v49 }
 0x375   :  { %v2543_v29 = vrot.slane %v2075_v18, %v3578_v49 }
 0x377   :  { %v2796_v13 = vsel %vm1032_vm10, %v2543_v29, %v2795_v36 }
 0x378   :  { %v2081_v27 = vpop.permute.xlu0 %2080  ;;  %v2797_v44 = vsel %vm2723_vm12, %v2547_v31, %v2796_v13  ;;  %v4729_v38 = vpop.permute.xlu1 %2149 }
 0x379   :  { %v2551_v61 = vrot.slane %v2081_v27, %v3578_v49 }
 0x37b   :  { %v2798_v54 = vsel %vm2725_vm13, %v2551_v61, %v2797_v44 }
 0x37c   :  { %v2087_v28 = vpop.permute.xlu0 %2086  ;;  %v2799_v19 = vsel %vm2727_vm14, %v2555_v52, %v2798_v54  ;;  %v4733_v35 = vpop.permute.xlu1 %2191 }
 0x37d   :  { %v2559_v63 = vrot.slane %v2087_v28, %v3578_v49  ;;  %v2627_v28 = vrot.slane %v4703_v57, %v3578_v49 }
 0x37f   :  { %v2800_v6 = vsel %vm2729_vm15, %v2559_v63, %v2799_v19 }
 0x380   :  { %v2093_v56 = vpop.permute.xlu0 %2092  ;;  %v2883_v16 = vsel %vm2852_vm0, %v2800_v6, 0.0  ;;  %v2132_v50 = vpop.permute.xlu1 %2131 }
 0x381   :  { %2884 = vadd.xlane.f32.xlu0 %v2883_v16  ;;  %v2567_v53 = vrot.slane %v2093_v56, %v3578_v49  ;;  %v2619_v18 = vrot.slane %v2132_v50, %v3578_v49 }
 0x383   :  { %v2801_v5 = vsel %vm1028_vm8, %v2567_v53, %v2563_v0 }
 0x384   :  { %v2099_v1 = vpop.permute.xlu0 %2098  ;;  %v4750_v7 = vpop.permute.xlu1 %2173  ;;  %v2802_v30 = vsel %vm1030_vm9, %v2571_v45, %v2801_v5  ;;  %v2695_v5 = vrot.slane %v4727_v4, %v3578_v49 }
 0x385   :  { %v2575_v39 = vrot.slane %v2099_v1, %v3578_v49 }
 0x387   :  { %v2803_v40 = vsel %vm1032_vm10, %v2575_v39, %v2802_v30 }
 0x388   :  { %v2105_v55 = vpop.permute.xlu0 %2104  ;;  %v2804_v60 = vsel %vm2723_vm12, %v2579_v34, %v2803_v40  ;;  %v2135_v62 = vpop.permute.xlu1 %2134 }
 0x389   :  { %v2583_v9 = vrot.slane %v2105_v55, %v3578_v49  ;;  %v2623_v31 = vrot.slane %v2135_v62, %v3578_v49  ;;  %v2643_v55 = vrot.slane %v4729_v38, %v3578_v49 }
 0x38b   :  { %v2805_v33 = vsel %vm2725_vm13, %v2583_v9, %v2804_v60 }
 0x38c   :  { %v2114_v21 = vpop.permute.xlu0 %2113  ;;  %v2806_v36 = vsel %vm2727_vm14, %v2587_v43, %v2805_v33  ;;  %v2177_v54 = vpop.permute.xlu1 %2176 }
 0x38d   :  { %v2595_v51 = vrot.slane %v2114_v21, %v3578_v49 }
 0x38f   :  { %v2808_v12 = vsel %vm1028_vm8, %v2599_v11, %v2595_v51 }
 0x390   :  { %v2120_v37 = vpop.permute.xlu0 %2119  ;;  %v2159_v21 = vpop.permute.xlu1 %2158 }
 0x391   :  { %v2603_v17 = vrot.slane %v2120_v37, %v3578_v49  ;;  %v2655_v50 = vrot.slane %v2159_v21, %v3578_v49 }
 0x393   :  { %v2809_v15 = vsel %vm1030_vm9, %v2603_v17, %v2808_v12 }
 0x394   :  { %v2141_v22 = vpop.permute.xlu0 %2140  ;;  %v2810_v2 = vsel %vm1032_vm10, %v2607_v47, %v2809_v15  ;;  %v2201_v45 = vpop.permute.xlu1 %2200  ;;  %v2675_v47 = vrot.slane %v4750_v7, %v3578_v49 }
 0x395   :  { %v2811_v32 = vsel %vm2723_vm12, %v2611_v24, %v2810_v2  ;;  %v2631_v8 = vrot.slane %v2141_v22, %v3578_v49  ;;  %v2659_v22 = vrot.slane %v4721_v46, %v3578_v49  ;;  %v2667_v46 = vrot.slane %v4725_v10, %v3578_v49 }
 0x396   :  { %v2699_v10 = vrot.slane %v4733_v35, %v3578_v49  ;;  %v2711_v35 = vrot.slane %v2201_v45, %v3578_v49 }
 0x397   :  { %v2815_v19 = vsel %vm1028_vm8, %v2631_v8, %v2627_v28 }
 0x398   :  { %v2144_v58 = vpop.permute.xlu0 %2143  ;;  %v2204_v60 = vpop.permute.xlu1 %2203 }
 0x399   :  { %v2635_v26 = vrot.slane %v2144_v58, %v3578_v49  ;;  %v2715_v43 = vrot.slane %v2204_v60, %v3578_v49 }
 0x39b   :  { %v2816_v16 = vsel %vm1030_vm9, %v2635_v26, %v2815_v19 }
 0x39c   :  { %v4731_v23 = vpop.permute.xlu0 %2164 }
 0x39d   :  { %v2663_v57 = vrot.slane %v4731_v23, %v3578_v49 }
 0x39f   :  { %v2822_v51 = vsel %vm1028_vm8, %v2663_v57, %v2659_v22 }
 0x3a0   :  { %v2147_v48 = vpop.permute.xlu0 %2146  ;;  %v2823_v12 = vsel %vm1030_vm9, %v2667_v46, %v2822_v51 }
 0x3a1   :  { %v2639_v63 = vrot.slane %v2147_v48, %v3578_v49 }
 0x3a3   :  { %v2817_v1 = vsel %vm1032_vm10, %v2639_v63, %v2816_v16 }
 0x3a4   :  { %v4738_v59 = vpop.permute.xlu0 %2185  ;;  %v2818_v58 = vsel %vm2723_vm12, %v2643_v55, %v2817_v1 }
 0x3a5   :  { %v2691_v38 = vrot.slane %v4738_v59, %v3578_v49 }
 0x3a7   :  { %v2829_v59 = vsel %vm1028_vm8, %v2695_v5, %v2691_v38  ;;  %vm3093_vm8 = vcmask 516096  }
 0x3a8   :  { %v2129_v20 = vpop.permute.xlu0 %2128  ;;  %v2830_v9 = vsel %vm1030_vm9, %v2699_v10, %v2829_v59  ;;  %v4937_v10 = vld [vmem:[#allocation9_spill] sm:$0xff] }
 0x3a9   :  { %v2615_v3 = vrot.slane %v2129_v20, %v3578_v49 }
 0x3ab   :  { %v2812_v42 = vsel %vm2725_vm13, %v2615_v3, %v2811_v32  ;;  %v2679_v3 = vrot.slane %v2177_v54, %v3578_v49 }
 0x3ac   :  { %v2171_v25 = vpop.permute.xlu0 %2170  ;;  %v2813_v13 = vsel %vm2727_vm14, %v2619_v18, %v2812_v42 }
 0x3ad   :  { %v2814_v52 = vsel %vm2729_vm15, %v2623_v31, %v2813_v13  ;;  %v2671_v17 = vrot.slane %v2171_v25, %v3578_v49 }
 0x3ae   :  { %v2889_v56 = vsel %vm2852_vm0, %v2814_v52, 0.0 }
 0x3af   :  { %v2824_v15 = vsel %vm1032_vm10, %v2671_v17, %v2823_v12 }
 0x3b0   :  { %v2111_v29 = vpop.permute.xlu0 %2110  ;;  %v2825_v40 = vsel %vm2723_vm12, %v2675_v47, %v2824_v15 }
 0x3b1   :  { %v2591_v41 = vrot.slane %v2111_v29, %v3578_v49  ;;  %v2826_v32 = vsel %vm2725_vm13, %v2679_v3, %v2825_v40 }
 0x3b3   :  { %v2807_v27 = vsel %vm2729_vm15, %v2591_v41, %v2806_v36 }
 0x3b4   :  { %v2153_v61 = vpop.permute.xlu0 %2152  ;;  %v2886_v44 = vsel %vm2852_vm0, %v2807_v27, 0.0 }
 0x3b5   :  { %2887 = vadd.xlane.f32.xlu0 %v2886_v44  ;;  %v2647_v14 = vrot.slane %v2153_v61, %v3578_v49 }
 0x3b7   :  { %v2819_v53 = vsel %vm2725_vm13, %v2647_v14, %v2818_v58 }
 0x3b8   :  { %v2195_v6 = vpop.permute.xlu0 %2194 }
 0x3b9   :  { %2890 = vadd.xlane.f32.xlu0 %v2889_v56  ;;  %v2703_v20 = vrot.slane %v2195_v6, %v3578_v49 }
 0x3bb   :  { %v2831_v34 = vsel %vm1032_vm10, %v2703_v20, %v2830_v9 }
 0x3bc   :  { %v2156_v37 = vpop.permute.xlu0 %2155 }
 0x3bd   :  { %v2651_v48 = vrot.slane %v2156_v37, %v3578_v49 }
 0x3bf   :  { %v2820_v23 = vsel %vm2727_vm14, %v2651_v48, %v2819_v53 }
 0x3c0   :  { %v2198_v0 = vpop.permute.xlu0 %2197  ;;  %v2821_v11 = vsel %vm2729_vm15, %v2655_v50, %v2820_v23 }
 0x3c1   :  { %v2892_v39 = vsel %vm2852_vm0, %v2821_v11, 0.0  ;;  %v2707_v4 = vrot.slane %v2198_v0, %v3578_v49 }
 0x3c2   :  { %2893 = vadd.xlane.f32.xlu0 %v2892_v39 }
 0x3c3   :  { %v2832_v24 = vsel %vm2723_vm12, %v2707_v4, %v2831_v34 }
 0x3c4   :  { %v2180_v30 = vpop.permute.xlu0 %2179  ;;  %v2833_v42 = vsel %vm2725_vm13, %v2711_v35, %v2832_v24 }
 0x3c5   :  { %v2683_v2 = vrot.slane %v2180_v30, %v3578_v49  ;;  %v2834_v36 = vsel %vm2727_vm14, %v2715_v43, %v2833_v42  ;;  %v4938_v30 = vld [vmem:[#allocation10_spill] sm:$0xff]  ;;  %v4942_v42 = vld [vmem:[#allocation13_spill] sm:$0xff] }
 0x3c7   :  { %v2827_v62 = vsel %vm2727_vm14, %v2683_v2, %v2826_v32  ;;  %v4939_v2 = vld [vmem:[#allocation12_spill] sm:$0xff] }
 0x3c8   :  { %v2183_v25 = vpop.permute.xlu0 %2182 }
 0x3c9   :  { %v2687_v7 = vrot.slane %v2183_v25, %v3578_v49  ;;  %v4940_v25 = vld [vmem:[#allocation11_spill] sm:$0xff] }
 0x3ca   :  { %v2855_v31 = vpop.xlane.xlu1 %2854 }
 0x3cb   :  { %v2828_v33 = vsel %vm2729_vm15, %v2687_v7, %v2827_v62  ;;  %v3113_v52 = vmul.f32 -1.442695, %v2855_v31  ;;  %v4941_v7 = vld [vmem:[#allocation14_spill] sm:$0xff] }
 0x3cc   :  { %v2207_v18 = vpop.permute.xlu0 %2206  ;;  %v2895_v29 = vsel %vm2852_vm0, %v2828_v33, 0.0 }
 0x3cd   :  { %v2719_v41 = vrot.slane %v2207_v18, %v3578_v49  ;;  %2896 = vadd.xlane.f32.xlu0 %v2895_v29  ;;  %3138 = vpow2.f32 %v3113_v52  ;;  %v4943_v29 = vld [vmem:[#allocation15_spill] sm:$0xff] }
 0x3ce   :  { %v2861_v8 = vpop.xlane.xlu1 %2860 }
 0x3cf   :  { %v2835_v13 = vsel %vm2729_vm15, %v2719_v41, %v2834_v36  ;;  %v3115_v28 = vmul.f32 -1.442695, %v2861_v8 }
 0x3d0   :  { %v2898_v27 = vsel %vm2852_vm0, %v2835_v13, 0.0 }
 0x3d1   :  { %2899 = vadd.xlane.f32.xlu0 %v2898_v27  ;;  %3140 = vpow2.f32 %v3115_v28 }
 0x3d2   :  { %v2864_v61 = vpop.xlane.xlu1 %2863 }
 0x3d3   :  { %v3116_v63 = vmul.f32 -1.442695, %v2864_v61 }
 0x3d5   :  { %3142 = vpow2.f32 %v3116_v63 }
 0x3d6   :  { %v2867_v44 = vpop.xlane.xlu1 %2866 }
 0x3d7   :  { %v3117_v19 = vmul.f32 -1.442695, %v2867_v44  ;;  %v3139_v21 = vpop.eup %3138 }
 0x3d8   :  { %v2949_v58 = vadd.f32 1.0, %v3139_v21 }
 0x3d9   :  { %3144 = vpow2.f32 %v3117_v19 }
 0x3da   :  { %v2870_v54 = vpop.xlane.xlu1 %2869 }
 0x3db   :  { %v3118_v56 = vmul.f32 -1.442695, %v2870_v54  ;;  %v3141_v57 = vpop.eup %3140 }
 0x3dc   :  { %v2951_v50 = vadd.f32 1.0, %v3141_v57 }
 0x3dd   :  { %3146 = vpow2.f32 %v3118_v56 }
 0x3de   :  { %v2873_v26 = vpop.xlane.xlu1 %2872 }
 0x3df   :  { %v3119_v16 = vmul.f32 -1.442695, %v2873_v26  ;;  %v3143_v37 = vpop.eup %3142 }
 0x3e0   :  { %v2952_v51 = vadd.f32 1.0, %v3143_v37 }
 0x3e1   :  { %3148 = vpow2.f32 %v3119_v16 }
 0x3e2   :  { %v2876_v6 = vpop.xlane.xlu1 %2875 }
 0x3e3   :  { %v3120_v1 = vmul.f32 -1.442695, %v2876_v6  ;;  %v3145_v22 = vpop.eup %3144 }
 0x3e4   :  { %v2953_v23 = vadd.f32 1.0, %v3145_v22 }
 0x3e5   :  { %3150 = vpow2.f32 %v3120_v1 }
 0x3e7   :  { %v3147_v48 = vpop.eup %3146 }
 0x3e8   :  { %v2954_v46 = vadd.f32 1.0, %v3147_v48 }
 0x3eb   :  { %v3149_v53 = vpop.eup %3148 }
 0x3ec   :  { %v2955_v11 = vadd.f32 1.0, %v3149_v53 }
 0x3ef   :  { %v3151_v38 = vpop.eup %3150 }
 0x3f0   :  { %v2956_v5 = vadd.f32 1.0, %v3151_v38 }
 0x3f9   :  { %v2858_v14 = vpop.xlane.xlu0 %2857 }
 0x3fa   :  { %v3114_v55 = vmul.f32 -1.442695, %v2858_v14 }
 0x3fc   :  { %3152 = vpow2.f32 %v3114_v55 }
 0x3fd   :  { %3154 = vrcp.f32 %v2949_v58  ;;  %v2879_v31 = vpop.xlane.xlu0 %2878 }
 0x3fe   :  { %3156 = vrcp.f32 %v2951_v50  ;;  %v3121_v54 = vmul.f32 -1.442695, %v2879_v31 }
 0x3ff   :  { %3158 = vrcp.f32 %v2952_v51 }
 0x401   :  { %v2882_v27 = vpop.xlane.xlu0 %2881 }
 0x402   :  { %v3122_v26 = vmul.f32 -1.442695, %v2882_v27 }
 0x406   :  { %v3153_v17 = vpop.eup %3152 }
 0x407   :  { %v2950_v0 = vadd.f32 1.0, %v3153_v17  ;;  %v3155_v39 = vpop.eup %3154 }
 0x408   :  { %v3157_v12 = vpop.eup %3156  ;;  %v3016_v20 = vrot.slane %v3155_v39, %v3578_v49 }
 0x409   :  { %3160 = vrcp.f32 %v2950_v0  ;;  %v3159_v45 = vpop.eup %3158  ;;  %v3025_v40 = vrot.slane %v3157_v12, %v4938_v30 }
 0x40a   :  { %3162 = vrcp.f32 %v2953_v23  ;;  %v3030_v3 = vrot.slane %v3159_v45, %v4939_v2 }
 0x40b   :  { %3164 = vrcp.f32 %v2954_v46 }
 0x40c   :  { %3166 = vrcp.f32 %v2955_v11 }
 0x40d   :  { %3168 = vrcp.f32 %v2956_v5 }
 0x40e   :  { %v2885_v8 = vpop.xlane.xlu0 %2884  ;;  %3170 = vpow2.f32 %v3121_v54 }
 0x40f   :  { %v3123_v52 = vmul.f32 -1.442695, %v2885_v8  ;;  %3172 = vpow2.f32 %v3122_v26 }
 0x411   :  { %3174 = vpow2.f32 %v3123_v52 }
 0x413   :  { %v3161_v59 = vpop.eup %3160 }
 0x414   :  { %v3163_v15 = vpop.eup %3162  ;;  %v3020_v47 = vrot.slane %v3161_v59, %v4937_v10 }
 0x415   :  { %v3165_v4 = vpop.eup %3164  ;;  %v3035_v35 = vrot.slane %v3163_v15, %v4940_v25 }
 0x416   :  { %v3167_v9 = vpop.eup %3166  ;;  %v3021_v34 = vsel %vm711_vm1, %v3020_v47, %v3016_v20  ;;  %v3040_v32 = vrot.slane %v3165_v4, %v4941_v7 }
 0x417   :  { %v3169_v24 = vpop.eup %3168  ;;  %v3026_v60 = vsel %vm718_vm2, %v3025_v40, %v3021_v34  ;;  %v3045_v43 = vrot.slane %v3167_v9, %v4942_v42 }
 0x418   :  { %v3031_v62 = vsel %vm725_vm3, %v3030_v3, %v3026_v60  ;;  %v3050_v41 = vrot.slane %v3169_v24, %v4943_v29  ;;  %v3171_v1 = vpop.eup %3170 }
 0x419   :  { %v3036_v33 = vsel %vm732_vm4, %v3035_v35, %v3031_v62  ;;  %v3173_v14 = vpop.eup %3172  ;;  %v2957_v37 = vadd.f32 1.0, %v3171_v1 }
 0x41a   :  { %v3041_v18 = vsel %vm739_vm5, %v3040_v32, %v3036_v33  ;;  %v2958_v48 = vadd.f32 1.0, %v3173_v14 }
 0x41b   :  { %v3046_v36 = vsel %vm746_vm6, %v3045_v43, %v3041_v18  ;;  %v3175_v55 = vpop.eup %3174 }
 0x41c   :  { %v3051_v13 = vsel %vm753_vm7, %v3050_v41, %v3046_v36  ;;  %v2959_v53 = vadd.f32 1.0, %v3175_v55 }
 0x41d   :  { %3094 = vst.msk [vmem:[#allocation6] sm:$0x1] %vm3093_vm8, %v3051_v13 }
 0x442   :  { %v2888_v61 = vpop.xlane.xlu0 %2887 }
 0x443   :  { %v3124_v63 = vmul.f32 -1.442695, %v2888_v61 }
 0x445   :  { %3176 = vpow2.f32 %v3124_v63 }
 0x446   :  { %v2891_v44 = vpop.xlane.xlu0 %2890 }
 0x447   :  { %v3125_v19 = vmul.f32 -1.442695, %v2891_v44 }
 0x449   :  { %3178 = vpow2.f32 %v3125_v19 }
 0x44f   :  { %v2894_v28 = vpop.xlane.xlu0 %2893  ;;  %v3177_v57 = vpop.eup %3176 }
 0x450   :  { %v3126_v6 = vmul.f32 -1.442695, %v2894_v28  ;;  %v2960_v51 = vadd.f32 1.0, %v3177_v57 }
 0x452   :  { %3180 = vpow2.f32 %v3126_v6 }
 0x453   :  { %v3179_v58 = vpop.eup %3178 }
 0x454   :  { %v2961_v38 = vadd.f32 1.0, %v3179_v58 }
 0x45a   :  { %v2897_v56 = vpop.xlane.xlu0 %2896 }
 0x45b   :  { %v3127_v16 = vmul.f32 -1.442695, %v2897_v56 }
 0x45c   :  { %v3181_v50 = vpop.eup %3180 }
 0x45d   :  { %3182 = vpow2.f32 %v3127_v16  ;;  %v2962_v17 = vadd.f32 1.0, %v3181_v50 }
 0x45e   :  { %v2900_v21 = vpop.xlane.xlu0 %2899 }
 0x45f   :  { %v3128_v22 = vmul.f32 -1.442695, %v2900_v21 }
 0x461   :  { %3184 = vpow2.f32 %v3128_v22 }
 0x462   :  { %3186 = vrcp.f32 %v2957_v37 }
 0x463   :  { %3188 = vrcp.f32 %v2958_v48 }
 0x464   :  { %3190 = vrcp.f32 %v2959_v53 }
 0x465   :  { %3192 = vrcp.f32 %v2960_v51 }
 0x466   :  { %3194 = vrcp.f32 %v2961_v38 }
 0x467   :  { %v3183_v23 = vpop.eup %3182  ;;  %3196 = vrcp.f32 %v2962_v17 }
 0x468   :  { %v2963_v46 = vadd.f32 1.0, %v3183_v23 }
 0x46a   :  { %3198 = vrcp.f32 %v2963_v46 }
 0x46b   :  { %v3185_v0 = vpop.eup %3184 }
 0x46c   :  { %v2964_v11 = vadd.f32 1.0, %v3185_v0  ;;  %v3187_v5 = vpop.eup %3186 }
 0x46d   :  { %v3189_v39 = vpop.eup %3188  ;;  %v3055_v4 = vrot.slane %v3187_v5, %v3578_v49 }
 0x46e   :  { %3200 = vrcp.f32 %v2964_v11  ;;  %v3191_v12 = vpop.eup %3190  ;;  %v3059_v15 = vrot.slane %v3189_v39, %v4937_v10 }
 0x46f   :  { %v3193_v45 = vpop.eup %3192  ;;  %v3064_v47 = vrot.slane %v3191_v12, %v4938_v30 }
 0x470   :  { %v3195_v59 = vpop.eup %3194  ;;  %v3069_v40 = vrot.slane %v3193_v45, %v4939_v2  ;;  %v3060_v34 = vsel %vm711_vm1, %v3059_v15, %v3055_v4 }
 0x471   :  { %v3197_v20 = vpop.eup %3196  ;;  %v3074_v3 = vrot.slane %v3195_v59, %v4940_v25  ;;  %v3065_v35 = vsel %vm718_vm2, %v3064_v47, %v3060_v34 }
 0x472   :  { %v3079_v24 = vrot.slane %v3197_v20, %v4941_v7  ;;  %v3070_v10 = vsel %vm725_vm3, %v3069_v40, %v3065_v35 }
 0x473   :  { %v3075_v49 = vsel %vm732_vm4, %v3074_v3, %v3070_v10 }
 0x474   :  { %v3199_v9 = vpop.eup %3198  ;;  %v3080_v2 = vsel %vm739_vm5, %v3079_v24, %v3075_v49 }
 0x475   :  { %v3084_v60 = vrot.slane %v3199_v9, %v4942_v42 }
 0x477   :  { %v3085_v25 = vsel %vm746_vm6, %v3084_v60, %v3080_v2 }
 0x478   :  { %v3201_v30 = vpop.eup %3200 }
 0x479   :  { %v3089_v32 = vrot.slane %v3201_v30, %v4943_v29 }
 0x47b   :  { %v3090_v7 = vsel %vm753_vm7, %v3089_v32, %v3085_v25 }
 0x47c   :  { %3095 = vst.msk [vmem:[#allocation6 + $0x1] sm:$0x1] %vm3093_vm8, %v3090_v7 }
 0x47d   :  { %3235 = shalt.err (!%p3232_p12)
}
 0x47e   :  { %s3236_s19 = scalar_lea.hbm %s4881_s3, 32 }
 0x47f   :  { %p3237_p13 = scmp.ne.s32.totalorder %s4881_s3, %s3236_s19  ;;  %p3240_p0 = scmp.lt.u32.totalorder %s3236_s19, %s4881_s3 }
 0x481   :  { %p3242_p1 = pnand %p3240_p0, %p3237_p13 }
 0x483   :  { %3245 = shalt.err (!%p3242_p1)
}
 0x484   :  { %s3256_s25 = smov 1  }
 0x485   :  { %3107 = dma.vmem_to_hbm [thread:$0]  %s3102_s15, 32, %s4881_s3, [#allocation5], %s3252_s23, %s3252_s23, %s3256_s25  }
 0x486   :  { %3248 = dma.done.wait [#allocation5], 32  }
 0x487   :  { %3249 = vsyncadd [#allocation5], 4294967264 }
 0x488   :  { %3111 = vsyncpa [#allocation4], 1 }
 0x489   :  { %3112 = vsyncpa [#allocation5], 1 }

</bundles_post_ra>
